<compile_context>
chip_gen: v5e
topology: v5e:2x2
jax: 0.10.0
libtpu: 0.0.40
codegen_flags: <defaults>
</compile_context>

<pallas_src>
import functools

import jax
import jax.numpy as jnp
from jax.experimental import pallas as pl
from jax.experimental.pallas import tpu as pltpu

BN_EPS = 1e-5
LANE = 128
SUBLANE = 8


def _round_up(x, m):
    return (x + m - 1) // m * m


# ---------------------------------------------------------------------------
# Shared in-kernel conv: im2col built from shifted window slices, MXU matmuls
# ---------------------------------------------------------------------------
def _conv_accum(x_img, w_ref, *, kh, kw, sh, sw, ho, wo, cin):
    """x_img: [Hp, Wp, cin] bf16 value, w_ref: [kh*kw, cin, C_pad] bf16 ref
       -> conv output [ho*wo, C_pad] f32 (MXU accumulation)."""
    c_pad = w_ref.shape[-1]
    acc = jnp.zeros((ho * wo, c_pad), jnp.float32)
    for t in range(kh * kw):               # static unroll over conv taps
        i, j = divmod(t, kw)
        lhs = x_img[i:i + (ho - 1) * sh + 1:sh,
                    j:j + (wo - 1) * sw + 1:sw, :]        # [ho, wo, cin]
        lhs = lhs.reshape(ho * wo, cin)
        # Small-K matmul (K = cin); the MXU pads the contraction internally.
        acc = acc + jnp.dot(lhs, w_ref[t],
                            preferred_element_type=jnp.float32)
    return acc


# ---------------------------------------------------------------------------
# Kernel 1: conv (in-kernel im2col) + per-image BN partial sums
# ---------------------------------------------------------------------------
def conv_stats_kernel(x_ref, w_ref, stats_ref, *, kh, kw, sh, sw, ho, wo, cin):
    acc = _conv_accum(x_ref[0], w_ref, kh=kh, kw=kw, sh=sh, sw=sw,
                      ho=ho, wo=wo, cin=cin)
    # Only the two rows the host-side reduction reads are written (no fill).
    stats_ref[0, 0:1, :] = jnp.sum(acc, axis=0, keepdims=True)
    stats_ref[0, 1:2, :] = jnp.sum(acc * acc, axis=0, keepdims=True)


# ---------------------------------------------------------------------------
# Kernel 2: conv recompute + BN apply + ReLU + pool, fused
# ---------------------------------------------------------------------------
def conv_bn_relu_pool_kernel(x_ref, w_ref, scale_ref, shift_ref, o_ref,
                             pad_ref, *, kh, kw, sh, sw, ho, wo, cin, cout,
                             pk, ps, pp, pho, pwo, lp, pooling_type):
    c_pad = pad_ref.shape[-1]
    hs, ws = pad_ref.shape[0], pad_ref.shape[1]

    acc = _conv_accum(x_ref[0], w_ref, kh=kh, kw=kw, sh=sh, sw=sw,
                      ho=ho, wo=wo, cin=cin)
    # BN apply + ReLU (avgpool's 1/k^2 is already folded into scale/shift).
    y = jnp.maximum(acc * scale_ref[...] + shift_ref[...], 0.0)

    if pp > 0:
        # Zero only the thin pool-border strips; the interior is fully
        # overwritten below.  Done every step so the kernel is safe even if
        # the parallel grid axis is split across TensorCores.
        pad_ref[0:pp, :, :] = jnp.zeros((pp, ws, c_pad), jnp.float32)
        pad_ref[pp + ho:hs, :, :] = jnp.zeros((hs - pp - ho, ws, c_pad),
                                              jnp.float32)
        pad_ref[:, lp - pp:lp, :] = jnp.zeros((hs, pp, c_pad), jnp.float32)
        pad_ref[:, lp + wo:ws, :] = jnp.zeros((hs, ws - lp - wo, c_pad),
                                              jnp.float32)
    # Sublane-aligned interior store (lp is a multiple of 8).
    pad_ref[pp:pp + ho, lp:lp + wo, :] = y.reshape(ho, wo, c_pad)

    # Pool from ref-sliced windows (bounded live range: one window + acc).
    out = None
    for i in range(pk):                    # static unroll over pool window
        for j in range(pk):
            win = pad_ref[pl.ds(i, pho, stride=ps),
                          pl.ds(lp - pp + j, pwo, stride=ps), :]
            if out is None:
                out = win
            elif pooling_type == "maxpool":
                out = jnp.maximum(out, win)
            else:                          # avgpool: pure sum (factor folded)
                out = out + win
    # Store only the real Cout channels (no padded lanes written to HBM).
    o_ref[0, :, :, :] = out[:, :, :cout]


# ---------------------------------------------------------------------------
# Wrapper
# ---------------------------------------------------------------------------
def cnn_basic_block(x_nchw, conv_w_oihw, conv_b, bn_gamma, bn_beta, *,
                    kernel, stride, padding=0, pool=True,
                    pooling_type="maxpool", pool_fix_size=False):
    """Forward pass matching CNN_BasicBlock.forward (module in training mode)."""
    # Training-mode BN subtracts the batch mean, which cancels the conv bias
    # exactly, so the bias is dropped from the compute (output unchanged).
    del conv_b
    N, Cin, H, W = x_nchw.shape
    Cout = conv_w_oihw.shape[0]
    kh = kw = kernel
    sh = sw = stride
    C_pad = _round_up(Cout, LANE)

    # Host-side prep (small vs. the old HBM patches/intermediate):
    # NCHW -> NHWC, spatial zero pad, bf16 cast.  Read twice by the kernels.
    x_nhwc = jnp.transpose(x_nchw, (0, 2, 3, 1)).astype(jnp.bfloat16)
    x_pad = jnp.pad(x_nhwc,
                    ((0, 0), (padding, padding), (padding, padding), (0, 0)))
    Hp, Wp = H + 2 * padding, W + 2 * padding
    ho = (Hp - kh) // sh + 1
    wo = (Wp - kw) // sw + 1

    # Weights as [kh*kw taps, Cin, C_pad] bf16.  Channel padding lives only on
    # this tiny weight tensor; padded channels are exact zeros everywhere and
    # are never written back to HBM.
    w_taps = jnp.transpose(conv_w_oihw, (2, 3, 1, 0)).reshape(
        kh * kw, Cin, Cout)
    w_taps = jnp.pad(w_taps, ((0, 0), (0, 0), (0, C_pad - Cout))
                     ).astype(jnp.bfloat16)

    # ---- Kernel 1: conv + per-image BN partials (no conv output stored) ----
    stats = pl.pallas_call(
        functools.partial(conv_stats_kernel, kh=kh, kw=kw, sh=sh, sw=sw,
                          ho=ho, wo=wo, cin=Cin),
        out_shape=jax.ShapeDtypeStruct((N, 2, C_pad), jnp.float32),
        grid=(N,),
        in_specs=[
            pl.BlockSpec((1, Hp, Wp, Cin), lambda n: (n, 0, 0, 0)),
            pl.BlockSpec((kh * kw, Cin, C_pad), lambda n: (0, 0, 0)),
        ],
        out_specs=pl.BlockSpec((1, 2, C_pad), lambda n: (n, 0, 0)),
        compiler_params=pltpu.CompilerParams(
            dimension_semantics=("parallel",)),
    )(x_pad, w_taps)

    # ---- Stage-2 BN stats -> folded per-channel scale/shift (tiny, plain JAX)
    M = N * ho * wo
    mean = jnp.sum(stats[:, 0, :], axis=0) / M
    var = jnp.maximum(jnp.sum(stats[:, 1, :], axis=0) / M - mean * mean, 0.0)
    gamma_pad = jnp.zeros((C_pad,), jnp.float32).at[:Cout].set(bn_gamma)
    beta_pad = jnp.zeros((C_pad,), jnp.float32).at[:Cout].set(bn_beta)
    scale = gamma_pad * jax.lax.rsqrt(var + BN_EPS)
    shift = beta_pad - mean * scale

    # ---- Pooling configuration ---------------------------------------------
    if pool:
        pk, ps, pp = kernel, stride, padding
        if pool_fix_size:
            pk, ps, pp = 3, 3, 1
        if pooling_type not in ("maxpool", "avgpool"):
            raise NotImplementedError(pooling_type)
        ptype = pooling_type
    else:
        pk, ps, pp, ptype = 1, 1, 0, "maxpool"        # identity "pool"
    # Zero padding for maxpool relies on ReLU-before-pool and this invariant:
    assert 2 * pp <= pk, "pool padding must be <= pool kernel // 2"
    if ptype == "avgpool":
        # Fold 1/(pk*pk) into scale/shift: a positive factor commutes with
        # ReLU, and padded positions contribute 0 either way
        # (count_include_pad=True semantics).
        scale = scale / float(pk * pk)
        shift = shift / float(pk * pk)

    pho = (ho + 2 * pp - pk) // ps + 1
    pwo = (wo + 2 * pp - pk) // ps + 1
    lp = _round_up(pp, SUBLANE) if pp > 0 else 0      # sublane-aligned interior
    Hs, Ws = ho + 2 * pp, lp + wo + pp

    # ---- Kernel 2: conv recompute + BN + ReLU + pool ------------------------
    pooled = pl.pallas_call(
        functools.partial(conv_bn_relu_pool_kernel, kh=kh, kw=kw, sh=sh, sw=sw,
                          ho=ho, wo=wo, cin=Cin, cout=Cout,
                          pk=pk, ps=ps, pp=pp, pho=pho, pwo=pwo, lp=lp,
                          pooling_type=ptype),
        out_shape=jax.ShapeDtypeStruct((N, pho, pwo, Cout), jnp.float32),
        grid=(N,),
        in_specs=[
            pl.BlockSpec((1, Hp, Wp, Cin), lambda n: (n, 0, 0, 0)),
            pl.BlockSpec((kh * kw, Cin, C_pad), lambda n: (0, 0, 0)),
            pl.BlockSpec((1, C_pad), lambda n: (0, 0)),
            pl.BlockSpec((1, C_pad), lambda n: (0, 0)),
        ],
        out_specs=pl.BlockSpec((1, pho, pwo, Cout), lambda n: (n, 0, 0, 0)),
        scratch_shapes=[pltpu.VMEM((Hs, Ws, C_pad), jnp.float32)],
        compiler_params=pltpu.CompilerParams(
            dimension_semantics=("parallel",)),
    )(x_pad, w_taps, scale.reshape(1, C_pad), shift.reshape(1, C_pad))

    return jnp.transpose(pooled, (0, 3, 1, 2))        # NHWC(Cout) -> NCHW


# ---------------------------------------------------------------------------
# Pure-JAX reference (PyTorch semantics, f32, incl. bias)
# ---------------------------------------------------------------------------
def reference(x, w, b, gamma, beta, stride, padding, pk, ps, pp, pooling_type):
    y = jax.lax.conv_general_dilated(
        x, w, (stride, stride), [(padding, padding), (padding, padding)],
        dimension_numbers=("NCHW", "OIHW", "NCHW"))
    y = y + b[None, :, None, None]
    mean = jnp.mean(y, axis=(0, 2, 3), keepdims=True)
    var = jnp.mean(jnp.square(y - mean), axis=(0, 2, 3), keepdims=True)
    y = (y - mean) * jax.lax.rsqrt(var + BN_EPS)
    y = y * gamma[None, :, None, None] + beta[None, :, None, None]
    y = jnp.maximum(y, 0.0)
    if pooling_type == "maxpool":
        y = jax.lax.reduce_window(
            y, -jnp.inf, jax.lax.max, (1, 1, pk, pk), (1, 1, ps, ps),
            [(0, 0), (0, 0), (pp, pp), (pp, pp)])
    else:  # avgpool, count_include_pad=True
        y = jax.lax.reduce_window(
            y, 0.0, jax.lax.add, (1, 1, pk, pk), (1, 1, ps, ps),
            [(0, 0), (0, 0), (pp, pp), (pp, pp)]) / float(pk * pk)
    return y


if __name__ == "__main__":
    # Module config: CNN_BasicBlock(inplanes=4, planes=8, kernel=3, stride=1,
    #                               padding=1, pool=True)
    N, Cin, H, W = 2, 4, 16, 16
    Cout, K, STRIDE, PAD = 8, 3, 1, 1

    key = jax.random.PRNGKey(0)
    k1, k2, k3, k4, k5 = jax.random.split(key, 5)
    x = jax.random.normal(k1, (N, Cin, H, W), jnp.float32)
    conv_w = 0.1 * jax.random.normal(k2, (Cout, Cin, K, K), jnp.float32)
    conv_b = 0.1 * jax.random.normal(k3, (Cout,), jnp.float32)
    bn_gamma = 1.0 + 0.1 * jax.random.normal(k4, (Cout,), jnp.float32)
    bn_beta = 0.1 * jax.random.normal(k5, (Cout,), jnp.float32)

    for ptype in ("maxpool", "avgpool"):
        out = cnn_basic_block(
            x, conv_w, conv_b, bn_gamma, bn_beta,
            kernel=K, stride=STRIDE, padding=PAD,
            pool=True, pooling_type=ptype, pool_fix_size=False)
        out = jax.block_until_ready(out)

        ref = reference(x, conv_w, conv_b, bn_gamma, bn_beta,
                        STRIDE, PAD, K, STRIDE, PAD, ptype)
        assert out.shape == ref.shape, (ptype, out.shape, ref.shape)
        assert jnp.allclose(out, ref, rtol=2e-2, atol=2e-2), \
            f"mismatch vs reference ({ptype})"

    print("KERNEL_OK")
</pallas_src>

<mosaic_0001>
module attributes {stable_mosaic.version = 11 : i64} {
  func.func @conv_stats_kernel(%arg0: i32, %arg1: memref<1x18x18x4xbf16, #tpu.memory_space<vmem>>, %arg2: memref<9x4x128xbf16, #tpu.memory_space<vmem>>, %arg3: memref<1x2x128xf32, #tpu.memory_space<vmem>>) attributes {dimension_semantics = [#tpu.dimension_semantics<parallel>], iteration_bounds = array<i64: 2>, scalar_prefetch = 0 : i64, scratch_operands = 0 : i64, tpu.core_type = #tpu.core_type<tc>, window_params = [{transform_indices = @transform_0, window_bounds = array<i64: 1, 18, 18, 4>}, {pipeline_mode = #tpu.pipeline_mode<synchronous>, transform_indices = @transform_1, window_bounds = array<i64: 9, 4, 128>}, {transform_indices = @transform_2, window_bounds = array<i64: 1, 2, 128>}]} {
    %c0 = arith.constant 0 : index
    %c0_0 = arith.constant 0 : index
    %c0_1 = arith.constant 0 : index
    %c0_2 = arith.constant 0 : index
    %0 = vector.load %arg1[%c0, %c0_0, %c0_1, %c0_2] : memref<1x18x18x4xbf16, #tpu.memory_space<vmem>>, vector<1x18x18x4xbf16>
    %1 = vector.shape_cast %0 : vector<1x18x18x4xbf16> to vector<18x18x4xbf16>
    %cst = arith.constant 0.000000e+00 : f32
    %2 = vector.broadcast %cst : f32 to vector<256x128xf32>
    %3 = vector.extract_strided_slice %1 {offsets = [0, 0, 0], sizes = [16, 16, 4], strides = [1, 1, 1]} : vector<18x18x4xbf16> to vector<16x16x4xbf16>
    %4 = vector.shape_cast %3 : vector<16x16x4xbf16> to vector<256x4xbf16>
    %c0_3 = arith.constant 0 : index
    %c0_4 = arith.constant 0 : index
    %c0_5 = arith.constant 0 : index
    %5 = vector.load %arg2[%c0_3, %c0_4, %c0_5] : memref<9x4x128xbf16, #tpu.memory_space<vmem>>, vector<1x4x128xbf16>
    %6 = vector.shape_cast %5 : vector<1x4x128xbf16> to vector<4x128xbf16>
    %cst_6 = arith.constant dense<0.000000e+00> : vector<256x128xf32>
    %7 = tpu.matmul %4, %6, %cst_6 {dimension_numbers = #tpu.dot_dimension_numbers<[1], [0], [0], [1], [0, 0, 1, 1], [], []>} : vector<256x4xbf16>, vector<4x128xbf16>, vector<256x128xf32> -> vector<256x128xf32>
    %8 = arith.addf %2, %7 : vector<256x128xf32>
    %9 = vector.extract_strided_slice %1 {offsets = [0, 1, 0], sizes = [16, 16, 4], strides = [1, 1, 1]} : vector<18x18x4xbf16> to vector<16x16x4xbf16>
    %10 = vector.shape_cast %9 : vector<16x16x4xbf16> to vector<256x4xbf16>
    %c1 = arith.constant 1 : index
    %c0_7 = arith.constant 0 : index
    %c0_8 = arith.constant 0 : index
    %11 = vector.load %arg2[%c1, %c0_7, %c0_8] : memref<9x4x128xbf16, #tpu.memory_space<vmem>>, vector<1x4x128xbf16>
    %12 = vector.shape_cast %11 : vector<1x4x128xbf16> to vector<4x128xbf16>
    %cst_9 = arith.constant dense<0.000000e+00> : vector<256x128xf32>
    %13 = tpu.matmul %10, %12, %cst_9 {dimension_numbers = #tpu.dot_dimension_numbers<[1], [0], [0], [1], [0, 0, 1, 1], [], []>} : vector<256x4xbf16>, vector<4x128xbf16>, vector<256x128xf32> -> vector<256x128xf32>
    %14 = arith.addf %8, %13 : vector<256x128xf32>
    %15 = vector.extract_strided_slice %1 {offsets = [0, 2, 0], sizes = [16, 16, 4], strides = [1, 1, 1]} : vector<18x18x4xbf16> to vector<16x16x4xbf16>
    %16 = vector.shape_cast %15 : vector<16x16x4xbf16> to vector<256x4xbf16>
    %c2 = arith.constant 2 : index
    %c0_10 = arith.constant 0 : index
    %c0_11 = arith.constant 0 : index
    %17 = vector.load %arg2[%c2, %c0_10, %c0_11] : memref<9x4x128xbf16, #tpu.memory_space<vmem>>, vector<1x4x128xbf16>
    %18 = vector.shape_cast %17 : vector<1x4x128xbf16> to vector<4x128xbf16>
    %cst_12 = arith.constant dense<0.000000e+00> : vector<256x128xf32>
    %19 = tpu.matmul %16, %18, %cst_12 {dimension_numbers = #tpu.dot_dimension_numbers<[1], [0], [0], [1], [0, 0, 1, 1], [], []>} : vector<256x4xbf16>, vector<4x128xbf16>, vector<256x128xf32> -> vector<256x128xf32>
    %20 = arith.addf %14, %19 : vector<256x128xf32>
    %21 = vector.extract_strided_slice %1 {offsets = [1, 0, 0], sizes = [16, 16, 4], strides = [1, 1, 1]} : vector<18x18x4xbf16> to vector<16x16x4xbf16>
    %22 = vector.shape_cast %21 : vector<16x16x4xbf16> to vector<256x4xbf16>
    %c3 = arith.constant 3 : index
    %c0_13 = arith.constant 0 : index
    %c0_14 = arith.constant 0 : index
    %23 = vector.load %arg2[%c3, %c0_13, %c0_14] : memref<9x4x128xbf16, #tpu.memory_space<vmem>>, vector<1x4x128xbf16>
    %24 = vector.shape_cast %23 : vector<1x4x128xbf16> to vector<4x128xbf16>
    %cst_15 = arith.constant dense<0.000000e+00> : vector<256x128xf32>
    %25 = tpu.matmul %22, %24, %cst_15 {dimension_numbers = #tpu.dot_dimension_numbers<[1], [0], [0], [1], [0, 0, 1, 1], [], []>} : vector<256x4xbf16>, vector<4x128xbf16>, vector<256x128xf32> -> vector<256x128xf32>
    %26 = arith.addf %20, %25 : vector<256x128xf32>
    %27 = vector.extract_strided_slice %1 {offsets = [1, 1, 0], sizes = [16, 16, 4], strides = [1, 1, 1]} : vector<18x18x4xbf16> to vector<16x16x4xbf16>
    %28 = vector.shape_cast %27 : vector<16x16x4xbf16> to vector<256x4xbf16>
    %c4 = arith.constant 4 : index
    %c0_16 = arith.constant 0 : index
    %c0_17 = arith.constant 0 : index
    %29 = vector.load %arg2[%c4, %c0_16, %c0_17] : memref<9x4x128xbf16, #tpu.memory_space<vmem>>, vector<1x4x128xbf16>
    %30 = vector.shape_cast %29 : vector<1x4x128xbf16> to vector<4x128xbf16>
    %cst_18 = arith.constant dense<0.000000e+00> : vector<256x128xf32>
    %31 = tpu.matmul %28, %30, %cst_18 {dimension_numbers = #tpu.dot_dimension_numbers<[1], [0], [0], [1], [0, 0, 1, 1], [], []>} : vector<256x4xbf16>, vector<4x128xbf16>, vector<256x128xf32> -> vector<256x128xf32>
    %32 = arith.addf %26, %31 : vector<256x128xf32>
    %33 = vector.extract_strided_slice %1 {offsets = [1, 2, 0], sizes = [16, 16, 4], strides = [1, 1, 1]} : vector<18x18x4xbf16> to vector<16x16x4xbf16>
    %34 = vector.shape_cast %33 : vector<16x16x4xbf16> to vector<256x4xbf16>
    %c5 = arith.constant 5 : index
    %c0_19 = arith.constant 0 : index
    %c0_20 = arith.constant 0 : index
    %35 = vector.load %arg2[%c5, %c0_19, %c0_20] : memref<9x4x128xbf16, #tpu.memory_space<vmem>>, vector<1x4x128xbf16>
    %36 = vector.shape_cast %35 : vector<1x4x128xbf16> to vector<4x128xbf16>
    %cst_21 = arith.constant dense<0.000000e+00> : vector<256x128xf32>
    %37 = tpu.matmul %34, %36, %cst_21 {dimension_numbers = #tpu.dot_dimension_numbers<[1], [0], [0], [1], [0, 0, 1, 1], [], []>} : vector<256x4xbf16>, vector<4x128xbf16>, vector<256x128xf32> -> vector<256x128xf32>
    %38 = arith.addf %32, %37 : vector<256x128xf32>
    %39 = vector.extract_strided_slice %1 {offsets = [2, 0, 0], sizes = [16, 16, 4], strides = [1, 1, 1]} : vector<18x18x4xbf16> to vector<16x16x4xbf16>
    %40 = vector.shape_cast %39 : vector<16x16x4xbf16> to vector<256x4xbf16>
    %c6 = arith.constant 6 : index
    %c0_22 = arith.constant 0 : index
    %c0_23 = arith.constant 0 : index
    %41 = vector.load %arg2[%c6, %c0_22, %c0_23] : memref<9x4x128xbf16, #tpu.memory_space<vmem>>, vector<1x4x128xbf16>
    %42 = vector.shape_cast %41 : vector<1x4x128xbf16> to vector<4x128xbf16>
    %cst_24 = arith.constant dense<0.000000e+00> : vector<256x128xf32>
    %43 = tpu.matmul %40, %42, %cst_24 {dimension_numbers = #tpu.dot_dimension_numbers<[1], [0], [0], [1], [0, 0, 1, 1], [], []>} : vector<256x4xbf16>, vector<4x128xbf16>, vector<256x128xf32> -> vector<256x128xf32>
    %44 = arith.addf %38, %43 : vector<256x128xf32>
    %45 = vector.extract_strided_slice %1 {offsets = [2, 1, 0], sizes = [16, 16, 4], strides = [1, 1, 1]} : vector<18x18x4xbf16> to vector<16x16x4xbf16>
    %46 = vector.shape_cast %45 : vector<16x16x4xbf16> to vector<256x4xbf16>
    %c7 = arith.constant 7 : index
    %c0_25 = arith.constant 0 : index
    %c0_26 = arith.constant 0 : index
    %47 = vector.load %arg2[%c7, %c0_25, %c0_26] : memref<9x4x128xbf16, #tpu.memory_space<vmem>>, vector<1x4x128xbf16>
    %48 = vector.shape_cast %47 : vector<1x4x128xbf16> to vector<4x128xbf16>
    %cst_27 = arith.constant dense<0.000000e+00> : vector<256x128xf32>
    %49 = tpu.matmul %46, %48, %cst_27 {dimension_numbers = #tpu.dot_dimension_numbers<[1], [0], [0], [1], [0, 0, 1, 1], [], []>} : vector<256x4xbf16>, vector<4x128xbf16>, vector<256x128xf32> -> vector<256x128xf32>
    %50 = arith.addf %44, %49 : vector<256x128xf32>
    %51 = vector.extract_strided_slice %1 {offsets = [2, 2, 0], sizes = [16, 16, 4], strides = [1, 1, 1]} : vector<18x18x4xbf16> to vector<16x16x4xbf16>
    %52 = vector.shape_cast %51 : vector<16x16x4xbf16> to vector<256x4xbf16>
    %c8 = arith.constant 8 : index
    %c0_28 = arith.constant 0 : index
    %c0_29 = arith.constant 0 : index
    %53 = vector.load %arg2[%c8, %c0_28, %c0_29] : memref<9x4x128xbf16, #tpu.memory_space<vmem>>, vector<1x4x128xbf16>
    %54 = vector.shape_cast %53 : vector<1x4x128xbf16> to vector<4x128xbf16>
    %cst_30 = arith.constant dense<0.000000e+00> : vector<256x128xf32>
    %55 = tpu.matmul %52, %54, %cst_30 {dimension_numbers = #tpu.dot_dimension_numbers<[1], [0], [0], [1], [0, 0, 1, 1], [], []>} : vector<256x4xbf16>, vector<4x128xbf16>, vector<256x128xf32> -> vector<256x128xf32>
    %56 = arith.addf %50, %55 : vector<256x128xf32>
    %cst_31 = arith.constant dense<0.000000e+00> : vector<128xf32>
    %57 = vector.multi_reduction <add>, %56, %cst_31 [0] : vector<256x128xf32> to vector<128xf32>
    %58 = vector.shape_cast %57 : vector<128xf32> to vector<1x128xf32>
    %c0_32 = arith.constant 0 : index
    %c0_33 = arith.constant 0 : index
    %c0_34 = arith.constant 0 : index
    %59 = vector.load %arg3[%c0_32, %c0_33, %c0_34] : memref<1x2x128xf32, #tpu.memory_space<vmem>>, vector<1x1x128xf32>
    %60 = vector.shape_cast %59 : vector<1x1x128xf32> to vector<1x128xf32>
    %61 = vector.shape_cast %58 : vector<1x128xf32> to vector<1x1x128xf32>
    tpu.vector_store %arg3[%c0_32, %c0_33, %c0_34], %61 {strides = array<i32>} : memref<1x2x128xf32, #tpu.memory_space<vmem>>, vector<1x1x128xf32>,
    %62 = arith.mulf %56, %56 : vector<256x128xf32>
    %cst_35 = arith.constant dense<0.000000e+00> : vector<128xf32>
    %63 = vector.multi_reduction <add>, %62, %cst_35 [0] : vector<256x128xf32> to vector<128xf32>
    %64 = vector.shape_cast %63 : vector<128xf32> to vector<1x128xf32>
    %c0_36 = arith.constant 0 : index
    %c1_37 = arith.constant 1 : index
    %c0_38 = arith.constant 0 : index
    %65 = vector.load %arg3[%c0_36, %c1_37, %c0_38] : memref<1x2x128xf32, #tpu.memory_space<vmem>>, vector<1x1x128xf32>
    %66 = vector.shape_cast %65 : vector<1x1x128xf32> to vector<1x128xf32>
    %67 = vector.shape_cast %64 : vector<1x128xf32> to vector<1x1x128xf32>
    tpu.vector_store %arg3[%c0_36, %c1_37, %c0_38], %67 {strides = array<i32>} : memref<1x2x128xf32, #tpu.memory_space<vmem>>, vector<1x1x128xf32>,
    return
  }
  func.func @transform_0(%arg0: i32) -> (i32, i32, i32, i32) {
    %c0_i32 = arith.constant 0 : i32
    %c0_i32_0 = arith.constant 0 : i32
    %c0_i32_1 = arith.constant 0 : i32
    %c0_i32_2 = arith.constant 0 : i32
    return %arg0, %c0_i32, %c0_i32_0, %c0_i32_1 : i32, i32, i32, i32
  }
  func.func @transform_1(%arg0: i32) -> (i32, i32, i32) {
    %c0_i32 = arith.constant 0 : i32
    %c0_i32_0 = arith.constant 0 : i32
    %c0_i32_1 = arith.constant 0 : i32
    %c0_i32_2 = arith.constant 0 : i32
    return %c0_i32, %c0_i32_0, %c0_i32_1 : i32, i32, i32
  }
  func.func @transform_2(%arg0: i32) -> (i32, i32, i32) {
    %c0_i32 = arith.constant 0 : i32
    %c0_i32_0 = arith.constant 0 : i32
    %c0_i32_1 = arith.constant 0 : i32
    return %arg0, %c0_i32, %c0_i32_0 : i32, i32, i32
  }
}

</mosaic_0001>

<bundles_post_ra>
// kernel: tpu_custom_call.1
= control target key start
LH: loop header
LB: loop body
LE: loop exit
PB: predicated region body
PF: predicated region fallthrough
CT: control target
= control target key end

     0   :  { %7 = vsyncpa [#allocation3], 0  ;;  %s3923_s0 = inlined_call_operand.vmem [shape: bf16[2,18,18,4], index: 0, kind: input, shape index: {}]   ;;  %s3924_s1 = inlined_call_operand.vmem [shape: bf16[9,4,128], index: 1, kind: input, shape index: {}]   ;;  %s3925_s2 = inlined_call_operand.hbm [shape: f32[2,2,128], index: 2, kind: output, shape index: {}]  }
   0x1   :  { %9 = vsyncpa [#allocation3 + $0x1], 0  ;;  %s2793_s9 = smov 0   ;;  %s2795_s10 = smov 0  }
   0x2   :  { %s2797_s11 = smov 0   ;;  %s2799_s12 = smov 0  }
   0x3 LB: > { %s2814_s13 = sadd.s32 4294967295, %s2776_s12   ;;  %s2393_s14 = sadd.s32 4294967294, %s2776_s12   ;;  %s2776_s12 = sphi %s2799_s12, %s4069_s12   ;;  %s2772_s11 = sphi %s2797_s11, %s4068_s11   ;;  %s2768_s10 = sphi %s2795_s10, %s4067_s10   ;;  %s2764_s9 = sphi %s2793_s9, %s4066_s9  }
   0x4   : > { %s2818_s15 = sadd.s32 1, %s2776_s12   ;;  %s69_s16 = sadd.s32 1, %s2772_s11 }
   0x5   : > { %s66_s17 = ssub.s32 %s2776_s12, %s2818_s15  ;;  %p79_p0 = scmp.ne.s32.totalorder %s2772_s11, %s2768_s10 }
   0x6   : > { %p67_p1 = scmp.eq.s32.totalorder %s66_s17, 0  ;;  %p80_p2 = scmp.eq.s32.totalorder %s2814_s13, 1 }
   0x7   : > { %p85_p3 = scmp.ne.s32.totalorder %s2768_s10, %s2764_s9  ;;  %p86_p4 = scmp.eq.s32.totalorder %s2393_s14, 1 }
   0x8   : > { %s2829_s18 = scalar_select %p67_p1, %s2772_s11, %s69_s16  }
   0x9   : > { %p2831_p5 = por %p80_p2, %p79_p0  ;;  %p2835_p6 = por %p86_p4, %p85_p3 }
   0xa   : > { %p2396_p7 = scmp.ge.s32.totalorder %s2776_s12, 1  ;;  %p115_p8 = scmp.lt.s32.totalorder %s2776_s12, 3 }
   0xc   : > { %p116_p9 = pnand %p2396_p7, %p115_p8 }
   0xe   : > { %119 = sbr.rel (%p116_p9) target bundleno = 781 (0x30d), region = 28 }
  0x13   : > { %v2399_v0 = vld [vmem:[%s3924_s1 + $0x2] sm:$0x3]  ;;  %vm684_vm0 = vcmask 1041408   ;;  %p137_p10 = scmp.lt.s32.totalorder %s2814_s13, 1  ;;  %v2512_v2 = vld [vmem:[%s3924_s1 + $0x4] sm:$0x3] }
  0x14   : > { %v686_v1 = vsel %vm684_vm0, %v2399_v0, 0  ;;  %v1227_v3 = vsel %vm684_vm0, %v2512_v2, 0  ;;  %v2529_v4 = vld [vmem:[%s3924_s1 + $0x6] sm:$0x3]  ;;  %v197_v5 = vld [vmem:[%s3924_s1] sm:$0x3] }
  0x15   : > { %2663 = vmatpush.bf16.msra.mxu1 %v686_v1  ;;  %2664 = vmatpush.bf16.msra.mxu2 %v686_v1  ;;  %s138_s25 = scalar_select %p137_p10, %s2814_s13, 1  ;;  %v2550_v6 = vld [vmem:[%s3924_s1 + $0x8] sm:$0x3]  ;;  %v1361_v7 = vsel %vm684_vm0, %v2529_v4, 0  ;;  %v906_v8 = vsel %vm684_vm0, %v197_v5, 0  ;;  %vm635_vm4 = vcmask 31744  }
  0x16   : > { %2665 = vmatpush.bf16.msra.mxu3 %v686_v1  ;;  %695 = vmatpush.bf16.msra.mxu0 %v686_v1  ;;  %v1517_v9 = vsel %vm684_vm0, %v2550_v6, 0  ;;  %vm198_vm1 = vsmask.f32 3328  ;;  %vm199_vm2 = vsmask.f32 7440  ;;  %vm1013_vm5 = vcmask 1042432  }
  0x17   : > { %s2666_s4 = smul.u32 216, %s138_s25  ;;  %vm2893_vm3 = vmor %vm198_vm1, %vm199_vm2  ;;  %vm1014_vm6 = vcmask 1046532   ;;  %s134_s25 = sand.u32 1, %s2768_s10  }
  0x18   : > { %vm3196_vm7 = vmor %vm1013_vm5, %vm1014_vm6  ;;  %s2397_s26 = sshll.u32 %s134_s25, 1  ;;  %s2642_s27 = sshll.u32 %s2814_s13, 1 }
  0x19   : > { %1236 = vmatpush.bf16.msrb.mxu2 %v1227_v3  ;;  %915 = vmatpush.bf16.msrb.mxu1 %v906_v8  ;;  %s2866_s7 = scalar_lea.vmem %s3923_s0, %s2666_s4  ;;  %s2329_s30 = scalar_lea.hbm %s3925_s2, %s2642_s27 }
  0x1a   : > { %1370 = vmatpush.bf16.msrb.mxu3 %v1361_v7  ;;  %1526 = vmatpush.bf16.msrb.mxu0 %v1517_v9  ;;  %v2869_v10 = vld [vmem:[%s2866_s7 + $0x30] sm:$0xf]  ;;  %v2872_v11 = vld [vmem:[%s2866_s7 + $0x34] sm:$0xf]  ;;  %v2875_v12 = vld [vmem:[%s2866_s7 + $0x38] sm:$0x1] }
  0x1b   : > { %v298_v13 = vshrl.u32 %v2869_v10, 16  ;;  %v301_v14 = vshll.u32 %v2869_v10, 16  ;;  %v307_v15 = vshll.u32 %v2872_v11, 16  ;;  %v311_v16 = vshrl.u32 %v2872_v11, 16  ;;  %v167_v17 = vld [vmem:[%s2866_s7 + $0x60] sm:$0xf] }
  0x1c   : > { %v317_v18 = vshll.u32 %v2875_v12, 16  ;;  %v2884_v19 = vld [vmem:[%s2866_s7 + $0x64] sm:$0xf]  ;;  %v169_v20 = vld [vmem:[%s2866_s7 + $0x68] sm:$0x1]  ;;  %v394_v21 = vshrl.u32 %v167_v17, 16 }
  0x1d   : > { %v300_v22 = vrot.slane %v298_v13, 4  ;;  %v303_v23 = vrot.slane %v301_v14, 5  ;;  %v309_v24 = vrot.slane %v307_v15, 5  ;;  %v313_v25 = vrot.slane %v311_v16, 4  ;;  %v179_v26 = vld [vmem:[%s2866_s7 + $0x90] sm:$0xf] }
  0x1e   : > { %v319_v27 = vrot.slane %v317_v18, 5  ;;  %v396_v28 = vrot.slane %v394_v21, 4  ;;  %v397_v29 = vshll.u32 %v167_v17, 16  ;;  %v403_v30 = vshll.u32 %v2884_v19, 16  ;;  %v180_v35 = vld [vmem:[%s2866_s7 + $0x94] sm:$0xf] }
  0x1f   : > { %v304_v31 = vor.u32 %v303_v23, %v300_v22  ;;  %v314_v32 = vor.u32 %v313_v25, %v309_v24  ;;  %v407_v33 = vshrl.u32 %v2884_v19, 16  ;;  %v413_v34 = vshll.u32 %v169_v20, 16  ;;  %v181_v45 = vld [vmem:[%s2866_s7 + $0x98] sm:$0x1]  ;;  %v2903_v61 = vld [vmem:[%s2866_s7] sm:$0xf] }
  0x20   : > { %v399_v37 = vrot.slane %v397_v29, 5  ;;  %v405_v38 = vrot.slane %v403_v30, 5  ;;  %v490_v39 = vshrl.u32 %v179_v26, 16  ;;  %v493_v47 = vshll.u32 %v179_v26, 16  ;;  %v2910_v1 = vld [vmem:[%s2866_s7 + $0x4] sm:$0xf] }
  0x21   : > { %v305_v40 = vrot.slane %v304_v31, 4  ;;  %v315_v41 = vrot.slane %v314_v32, 4  ;;  %v409_v42 = vrot.slane %v407_v33, 4  ;;  %v415_v43 = vrot.slane %v413_v34, 5  ;;  %v2913_v2 = vld [vmem:[%s2866_s7 + $0x8] sm:$0x1] }
  0x22   : > { %v400_v44 = vor.u32 %v399_v37, %v396_v28  ;;  %v492_v46 = vrot.slane %v490_v39, 4  ;;  %v499_v48 = vshll.u32 %v180_v35, 16  ;;  %v503_v52 = vshrl.u32 %v180_v35, 16  ;;  %v2929_v23 = vld [vmem:[%s2866_s7 + $0x3c] sm:$0xf]  ;;  %s136_s3 = scalar_lea.vmem [#allocation2], %s2397_s26 }
  0x23   : > { %v310_v49 = vsel %vm2893_vm3, %v305_v40, %v309_v24  ;;  %v320_v50 = vsel %vm2893_vm3, %v315_v41, %v319_v27  ;;  %v410_v51 = vor.u32 %v409_v42, %v405_v38  ;;  %v495_v56 = vrot.slane %v493_v47, 5  ;;  %v2932_v24 = vld [vmem:[%s2866_s7 + $0x40] sm:$0xf]  ;;  %v2937_v29 = vld [vmem:[%s2866_s7 + $0x44] sm:$0x1]  ;;  %s2331_s4 = sshll.u32 %s136_s3, 4  ;;  %s2332_s4 = int_to_ptr.vmem [resolvable:$true] %s2331_s4 }
  0x24   : > { %v595_v53 = vunpack.c.l.b16 %v310_v49  ;;  %v596_v54 = vunpack.c.l.b16 %v320_v50  ;;  %v401_v55 = vrot.slane %v400_v44, 4  ;;  %v501_v58 = vrot.slane %v499_v48, 5  ;;  %v2952_v47 = vld [vmem:[%s2866_s7 + $0x70] sm:$0xf]  ;;  %s2333_s5 = sshll.u32 %s2329_s30, 4  ;;  %s2319_s13 = scalar_lea.sflag [#allocation3], %s134_s25  ;;  %s2334_s5 = int_to_ptr.hbm [resolvable:$true] %s2333_s5 }
  0x25   : > { %v411_v57 = vrot.slane %v410_v51, 4  ;;  %v505_v59 = vrot.slane %v503_v52, 4  ;;  %v509_v60 = vshll.u32 %v181_v45, 16  ;;  %v496_v0 = vor.u32 %v495_v56, %v492_v46  ;;  %v2959_v51 = vld [vmem:[%s2866_s7 + $0x74] sm:$0x1]  ;;  %s2728_s6 = sshra.s32 %s2334_s5, 4  ;;  %s2729_s6 = int_to_ptr.hbm [resolvable:$true] %s2728_s6 }
  0x26   : > { %v2905_v62 = vpack.c.b16 %v596_v54, %v595_v53  ;;  %v406_v63 = vsel %vm2893_vm3, %v401_v55, %v405_v38  ;;  %v202_v9 = vshrl.u32 %v2903_v61, 16  ;;  %v205_v13 = vshll.u32 %v2903_v61, 16  ;;  %v2945_v38 = vld [vmem:[%s2866_s7 + $0x6c] sm:$0xf]  ;;  %s2734_s16 = scalar_lea.hbm %s3925_s2, 4  ;;  %p2735_p0 = scmp.lt.s32.totalorder %s2729_s6, %s3925_s2 }
  0x27   : > { %v416_v3 = vsel %vm2893_vm3, %v411_v57, %v415_v43  ;;  %v603_v4 = vunpack.c.l.b16 %v406_v63  ;;  %v506_v5 = vor.u32 %v505_v59, %v501_v58  ;;  %v511_v6 = vrot.slane %v509_v60, 5 }
  0x28   : > { %2404 = vmatmul.msk.bf16.vlgmr.msra.gmra.mxu1 %vm635_vm4, %v2905_v62  ;;  %v604_v7 = vunpack.c.l.b16 %v416_v3  ;;  %v497_v8 = vrot.slane %v496_v0, 4  ;;  %v211_v15 = vshll.u32 %v2910_v1, 16  ;;  %v215_v16 = vshrl.u32 %v2910_v1, 16 }
  0x29   : > { %v507_v14 = vrot.slane %v506_v5, 4  ;;  %v221_v17 = vshll.u32 %v2913_v2, 16  ;;  %v204_v21 = vrot.slane %v202_v9, 4  ;;  %v207_v22 = vrot.slane %v205_v13, 5  ;;  %v182_v5 = vld [vmem:[%s2866_s7 + $0x9c] sm:$0xf] }
  0x2a   : > { %v2924_v18 = vpack.c.b16 %v604_v7, %v603_v4  ;;  %v502_v20 = vsel %vm2893_vm3, %v497_v8, %v501_v58  ;;  %v213_v27 = vrot.slane %v211_v15, 5  ;;  %v217_v28 = vrot.slane %v215_v16, 4  ;;  %v183_v9 = vld [vmem:[%s2866_s7 + $0xa0] sm:$0xf] }
  0x2b   : > { %v512_v25 = vsel %vm2893_vm3, %v507_v14, %v511_v6  ;;  %v611_v26 = vunpack.c.l.b16 %v502_v20  ;;  %v208_v31 = vor.u32 %v207_v22, %v204_v21  ;;  %v223_v32 = vrot.slane %v221_v17, 5  ;;  %v184_v17 = vld [vmem:[%s2866_s7 + $0xa4] sm:$0x1] }
  0x2c   : > { %3970 = vst [vmem:[#allocation5_spill] sm:$0xff] %v2924_v18  ;;  %2408 = vmatmul.msk.bf16.vlgmr.msra.gmra.mxu2 %vm635_vm4, %v2924_v18  ;;  %v612_v30 = vunpack.c.l.b16 %v512_v25  ;;  %v218_v33 = vor.u32 %v217_v28, %v213_v27  ;;  %v322_v34 = vshrl.u32 %v2929_v23, 16  ;;  %v325_v35 = vshll.u32 %v2929_v23, 16 }
  0x2d   : > { %v331_v37 = vshll.u32 %v2932_v24, 16  ;;  %v209_v40 = vrot.slane %v208_v31, 4  ;;  %v335_v41 = vshrl.u32 %v2932_v24, 16  ;;  %v341_v42 = vshll.u32 %v2937_v29, 16 }
  0x2e   : > { %v2947_v39 = vpack.c.b16 %v612_v30, %v611_v26  ;;  %v219_v43 = vrot.slane %v218_v33, 4  ;;  %v324_v44 = vrot.slane %v322_v34, 4  ;;  %v327_v45 = vrot.slane %v325_v35, 5  ;;  %v2977_v35 = vld [vmem:[%s2866_s7 + $0xc] sm:$0xf] }
  0x2f   : > { %v333_v46 = vrot.slane %v331_v37, 5  ;;  %v214_v48 = vsel %vm2893_vm3, %v209_v40, %v213_v27  ;;  %v337_v49 = vrot.slane %v335_v41, 4  ;;  %v343_v50 = vrot.slane %v341_v42, 5 }
  0x30   : > { %3971 = vst [vmem:[#allocation6_spill] sm:$0xff] %v2947_v39  ;;  %2412 = vmatmul.msk.bf16.vlgmr.msra.gmra.mxu3 %vm635_vm4, %v2947_v39  ;;  %v418_v52 = vshrl.u32 %v2945_v38, 16  ;;  %v224_v53 = vsel %vm2893_vm3, %v219_v43, %v223_v32  ;;  %v587_v54 = vunpack.c.l.b16 %v214_v48  ;;  %v328_v55 = vor.u32 %v327_v45, %v324_v44  ;;  %v2984_v43 = vld [vmem:[%s2866_s7 + $0x10] sm:$0xf]  ;;  %v2987_v48 = vld [vmem:[%s2866_s7 + $0x14] sm:$0x1] }
  0x31   : > { %v421_v56 = vshll.u32 %v2945_v38, 16  ;;  %v588_v57 = vunpack.c.l.b16 %v224_v53  ;;  %v338_v58 = vor.u32 %v337_v49, %v333_v46  ;;  %v427_v60 = vshll.u32 %v2952_v47, 16  ;;  %v3164_v39 = vld [vmem:[%s2866_s7 + $0x2c] sm:$0x1] }
  0x32   : > { %v420_v59 = vrot.slane %v418_v52, 4  ;;  %v329_v63 = vrot.slane %v328_v55, 4  ;;  %v431_v3 = vshrl.u32 %v2952_v47, 16  ;;  %v437_v4 = vshll.u32 %v2959_v51, 16 }
  0x33   : > { %v423_v0 = vrot.slane %v421_v56, 5  ;;  %v619_v6 = vpack.c.b16 %v588_v57, %v587_v54  ;;  %v339_v7 = vrot.slane %v338_v58, 4  ;;  %v429_v8 = vrot.slane %v427_v60, 5  ;;  %v2997_v58 = vld [vmem:[%s2866_s7 + $0x48] sm:$0xf] }
  0x34   : > { %v334_v13 = vsel %vm2893_vm3, %v329_v63, %v333_v46  ;;  %v433_v15 = vrot.slane %v431_v3, 4  ;;  %v439_v16 = vrot.slane %v437_v4, 5  ;;  %v514_v22 = vshrl.u32 %v182_v5, 16  ;;  %v3002_v3 = vld [vmem:[%s2866_s7 + $0x4c] sm:$0xf] }
  0x35   : > { %v424_v14 = vor.u32 %v423_v0, %v420_v59  ;;  %2400 = vmatmul.msk.bf16.vlgmr.msra.gmra.mxu0 %vm635_vm4, %v619_v6  ;;  %v344_v20 = vsel %vm2893_vm3, %v339_v7, %v343_v50  ;;  %v597_v21 = vunpack.c.l.b16 %v334_v13  ;;  %v517_v25 = vshll.u32 %v182_v5, 16 }
  0x36   : > { %v598_v26 = vunpack.c.l.b16 %v344_v20  ;;  %v434_v28 = vor.u32 %v433_v15, %v429_v8  ;;  %v523_v30 = vshll.u32 %v183_v9, 16  ;;  %v516_v31 = vrot.slane %v514_v22, 4  ;;  %v3009_v15 = vld [vmem:[%s2866_s7 + $0x50] sm:$0x1] }
  0x37   : > { %v425_v27 = vrot.slane %v424_v14, 4  ;;  %v519_v32 = vrot.slane %v517_v25, 5  ;;  %v527_v33 = vshrl.u32 %v183_v9, 16  ;;  %v533_v34 = vshll.u32 %v184_v17, 16 }
  0x38   : > { %v2979_v37 = vpack.c.b16 %v598_v26, %v597_v21  ;;  %v435_v41 = vrot.slane %v434_v28, 4  ;;  %v525_v42 = vrot.slane %v523_v30, 5  ;;  %v226_v52 = vshrl.u32 %v2977_v35, 16  ;;  %v3020_v28 = vld [vmem:[%s2866_s7 + $0x78] sm:$0xf] }
  0x39   : > { %v430_v40 = vsel %vm2893_vm3, %v425_v27, %v429_v8  ;;  %v520_v45 = vor.u32 %v519_v32, %v516_v31  ;;  %v529_v46 = vrot.slane %v527_v33, 4  ;;  %v535_v50 = vrot.slane %v533_v34, 5  ;;  %v3024_v34 = vld [vmem:[%s2866_s7 + $0x7c] sm:$0xf] }
  0x3a   : > { %v605_v44 = vunpack.c.l.b16 %v430_v40  ;;  %2405 = vmatmul.msk.bf16.gmra.mxu1 %vm635_vm4, %v2979_v37  ;;  %v440_v49 = vsel %vm2893_vm3, %v435_v41, %v439_v16  ;;  %v229_v53 = vshll.u32 %v2977_v35, 16  ;;  %v235_v57 = vshll.u32 %v2984_v43, 16 }
  0x3b   : > { %v606_v54 = vunpack.c.l.b16 %v440_v49  ;;  %v521_v55 = vrot.slane %v520_v45, 4  ;;  %v530_v56 = vor.u32 %v529_v46, %v525_v42  ;;  %v228_v59 = vrot.slane %v226_v52, 4 }
  0x3c   : > { %v231_v60 = vrot.slane %v229_v53, 5  ;;  %v239_v63 = vshrl.u32 %v2984_v43, 16  ;;  %v245_v0 = vshll.u32 %v2987_v48, 16  ;;  %v237_v7 = vrot.slane %v235_v57, 5 }
  0x3d   : > { %v3004_v4 = vpack.c.b16 %v606_v54, %v605_v44  ;;  %v526_v5 = vsel %vm2893_vm3, %v521_v55, %v525_v42  ;;  %v531_v6 = vrot.slane %v530_v56, 4  ;;  %v346_v17 = vshrl.u32 %v2997_v58, 16 }
  0x3e   : > { %v613_v8 = vunpack.c.l.b16 %v526_v5  ;;  %v232_v9 = vor.u32 %v231_v60, %v228_v59  ;;  %v241_v13 = vrot.slane %v239_v63, 4  ;;  %v247_v14 = vrot.slane %v245_v0, 5 }
  0x3f   : > { %2409 = vmatmul.msk.bf16.gmra.mxu2 %vm635_vm4, %v3004_v4  ;;  %v536_v16 = vsel %vm2893_vm3, %v531_v6, %v535_v50  ;;  %v349_v20 = vshll.u32 %v2997_v58, 16  ;;  %v355_v21 = vshll.u32 %v3002_v3, 16  ;;  %v359_v27 = vshrl.u32 %v3002_v3, 16  ;;  %v3031_v50 = vld [vmem:[%s2866_s7 + $0x80] sm:$0x1] }
  0x40   : > { %v614_v22 = vunpack.c.l.b16 %v536_v16  ;;  %v233_v25 = vrot.slane %v232_v9, 4  ;;  %v242_v26 = vor.u32 %v241_v13, %v237_v7  ;;  %v348_v30 = vrot.slane %v346_v17, 4  ;;  %v3050_v16 = vld [vmem:[%s2866_s7 + $0xac] sm:$0xf]  ;;  %v3053_v17 = vld [vmem:[%s2866_s7 + $0xb0] sm:$0x1] }
  0x41   : > { %v351_v31 = vrot.slane %v349_v20, 5  ;;  %v357_v32 = vrot.slane %v355_v21, 5  ;;  %v365_v33 = vshll.u32 %v3009_v15, 16  ;;  %v361_v44 = vrot.slane %v359_v27, 4  ;;  %3974 = vst [vmem:[#allocation9_spill] sm:$0xff] %v3050_v16 }
  0x42   : > { %v3026_v40 = vpack.c.b16 %v614_v22, %v613_v8  ;;  %v238_v41 = vsel %vm2893_vm3, %v233_v25, %v237_v7  ;;  %v243_v42 = vrot.slane %v242_v26, 4  ;;  %v442_v52 = vshrl.u32 %v3020_v28, 16  ;;  %v3043_v8 = vld [vmem:[%s2866_s7 + $0xa8] sm:$0xf]  ;;  %3975 = vst [vmem:[#allocation10_spill] sm:$0xff] %v3053_v17 }
  0x43   : > { %v589_v45 = vunpack.c.l.b16 %v238_v41  ;;  %v352_v46 = vor.u32 %v351_v31, %v348_v30  ;;  %v367_v49 = vrot.slane %v365_v33, 5  ;;  %v362_v54 = vor.u32 %v361_v44, %v357_v32  ;;  %3973 = vst [vmem:[#allocation8_spill] sm:$0xff] %v3043_v8 }
  0x44   : > { %3972 = vst [vmem:[#allocation7_spill] sm:$0xff] %v3026_v40  ;;  %2413 = vmatmul.msk.bf16.gmra.mxu3 %vm635_vm4, %v3026_v40  ;;  %v248_v53 = vsel %vm2893_vm3, %v243_v42, %v247_v14  ;;  %v445_v55 = vshll.u32 %v3020_v28, 16  ;;  %v451_v56 = vshll.u32 %v3024_v34, 16  ;;  %v444_v60 = vrot.slane %v442_v52, 4  ;;  %v3067_v52 = vld [vmem:[%s2866_s7 + $0x18] sm:$0xf] }
  0x45   : > { %v590_v57 = vunpack.c.l.b16 %v248_v53  ;;  %v353_v59 = vrot.slane %v352_v46, 4  ;;  %v455_v63 = vshrl.u32 %v3024_v34, 16  ;;  %v363_v0 = vrot.slane %v362_v54, 4  ;;  %v3153_v40 = vld [vmem:[%s2866_s7 + $0x24] sm:$0xf] }
  0x46   : > { %v447_v5 = vrot.slane %v445_v55, 5  ;;  %v453_v6 = vrot.slane %v451_v56, 5  ;;  %v461_v7 = vshll.u32 %v3031_v50, 16  ;;  %v538_v30 = vshrl.u32 %v3043_v8, 16  ;;  %v3072_v56 = vld [vmem:[%s2866_s7 + $0x1c] sm:$0xf] }
  0x47   : > { %v3045_v9 = vpack.c.b16 %v590_v57, %v589_v45  ;;  %v358_v13 = vsel %vm2893_vm3, %v353_v59, %v357_v32  ;;  %v457_v14 = vrot.slane %v455_v63, 4  ;;  %v368_v20 = vsel %vm2893_vm3, %v363_v0, %v367_v49  ;;  %v3075_v57 = vld [vmem:[%s2866_s7 + $0x20] sm:$0x1] }
  0x48   : > { %v599_v21 = vunpack.c.l.b16 %v358_v13  ;;  %v448_v22 = vor.u32 %v447_v5, %v444_v60  ;;  %v463_v25 = vrot.slane %v461_v7, 5  ;;  %v600_v26 = vunpack.c.l.b16 %v368_v20 }
  0x49   : > { %2401 = vmatmul.msk.bf16.gmra.mxu0 %vm635_vm4, %v3045_v9  ;;  %v458_v27 = vor.u32 %v457_v14, %v453_v6  ;;  %v541_v31 = vshll.u32 %v3043_v8, 16  ;;  %v547_v33 = vshll.u32 %v3050_v16, 16  ;;  %v551_v41 = vshrl.u32 %v3050_v16, 16 }
  0x4a   : > { %v449_v32 = vrot.slane %v448_v22, 4  ;;  %v557_v42 = vshll.u32 %v3053_v17, 16  ;;  %v3064_v44 = vpack.c.b16 %v600_v26, %v599_v21  ;;  %v540_v46 = vrot.slane %v538_v30, 4  ;;  %v3087_v26 = vld [vmem:[%s2866_s7 + $0x54] sm:$0xf] }
  0x4b   : > { %v459_v45 = vrot.slane %v458_v27, 4  ;;  %v543_v49 = vrot.slane %v541_v31, 5  ;;  %v549_v54 = vrot.slane %v547_v33, 5  ;;  %v553_v55 = vrot.slane %v551_v41, 4  ;;  %v3131_v17 = vld [vmem:[%s2866_s7 + $0xb4] sm:$0xf] }
  0x4c   : > { %3976 = vst [vmem:[#allocation11_spill] sm:$0xff] %v3064_v44  ;;  %v454_v53 = vsel %vm2893_vm3, %v449_v32, %v453_v6  ;;  %2406 = vmatmul.msk.bf16.gmra.mxu1 %vm635_vm4, %v3064_v44  ;;  %v559_v0 = vrot.slane %v557_v42, 5  ;;  %v250_v6 = vshrl.u32 %v3067_v52, 16  ;;  %v253_v13 = vshll.u32 %v3067_v52, 16  ;;  %v3092_v32 = vld [vmem:[%s2866_s7 + $0x58] sm:$0xf] }
  0x4d   : > { %v464_v59 = vsel %vm2893_vm3, %v459_v45, %v463_v25  ;;  %v607_v60 = vunpack.c.l.b16 %v454_v53  ;;  %v544_v63 = vor.u32 %v543_v49, %v540_v46  ;;  %v554_v7 = vor.u32 %v553_v55, %v549_v54  ;;  %v3097_v46 = vld [vmem:[%s2866_s7 + $0x5c] sm:$0x1]  ;;  %3979 = vst [vmem:[#allocation14_spill] sm:$0xff] %v3131_v17 }
  0x4e   : > { %v608_v5 = vunpack.c.l.b16 %v464_v59  ;;  %v259_v20 = vshll.u32 %v3072_v56, 16  ;;  %v263_v21 = vshrl.u32 %v3072_v56, 16  ;;  %v269_v22 = vshll.u32 %v3075_v57, 16 }
  0x4f   : > { %v545_v14 = vrot.slane %v544_v63, 4  ;;  %v555_v27 = vrot.slane %v554_v7, 4  ;;  %v252_v30 = vrot.slane %v250_v6, 4  ;;  %v255_v31 = vrot.slane %v253_v13, 5  ;;  %v3107_v7 = vld [vmem:[%s2866_s7 + $0x84] sm:$0xf] }
  0x50   : > { %v3089_v25 = vpack.c.b16 %v608_v5, %v607_v60  ;;  %v261_v41 = vrot.slane %v259_v20, 5  ;;  %v265_v42 = vrot.slane %v263_v21, 4  ;;  %v271_v45 = vrot.slane %v269_v22, 5  ;;  %3977 = vst [vmem:[#allocation12_spill] sm:$0xff] %v3107_v7 }
  0x51   : > { %v550_v33 = vsel %vm2893_vm3, %v545_v14, %v549_v54  ;;  %v560_v49 = vsel %vm2893_vm3, %v555_v27, %v559_v0  ;;  %v256_v55 = vor.u32 %v255_v31, %v252_v30  ;;  %v370_v59 = vshrl.u32 %v3087_v26, 16  ;;  %v3114_v30 = vld [vmem:[%s2866_s7 + $0x88] sm:$0xf] }
  0x52   : > { %2410 = vmatmul.msk.bf16.gmra.mxu2 %vm635_vm4, %v3089_v25  ;;  %v615_v53 = vunpack.c.l.b16 %v550_v33  ;;  %v616_v60 = vunpack.c.l.b16 %v560_v49  ;;  %v266_v63 = vor.u32 %v265_v42, %v261_v41  ;;  %v373_v54 = vshll.u32 %v3087_v26, 16  ;;  %v3119_v49 = vld [vmem:[%s2866_s7 + $0x8c] sm:$0x1] }
  0x53   : > { %v379_v5 = vshll.u32 %v3092_v32, 16  ;;  %v257_v6 = vrot.slane %v256_v55, 4  ;;  %v372_v13 = vrot.slane %v370_v59, 4  ;;  %v383_v14 = vshrl.u32 %v3092_v32, 16 }
  0x54   : > { %v389_v0 = vshll.u32 %v3097_v46, 16  ;;  %v3111_v20 = vpack.c.b16 %v616_v60, %v615_v53  ;;  %v267_v21 = vrot.slane %v266_v63, 4  ;;  %v375_v22 = vrot.slane %v373_v54, 5 }
  0x55   : > { %v381_v27 = vrot.slane %v379_v5, 5  ;;  %v262_v31 = vsel %vm2893_vm3, %v257_v6, %v261_v41  ;;  %v385_v33 = vrot.slane %v383_v14, 4  ;;  %v466_v55 = vshrl.u32 %v3107_v7, 16 }
  0x56   : > { %3978 = vst [vmem:[#allocation13_spill] sm:$0xff] %v3111_v20  ;;  %v391_v42 = vrot.slane %v389_v0, 5  ;;  %2414 = vmatmul.msk.bf16.gmra.mxu3 %vm635_vm4, %v3111_v20  ;;  %v272_v53 = vsel %vm2893_vm3, %v267_v21, %v271_v45  ;;  %v591_v59 = vunpack.c.l.b16 %v262_v31  ;;  %v376_v60 = vor.u32 %v375_v22, %v372_v13  ;;  %v3136_v22 = vld [vmem:[%s2866_s7 + $0xb8] sm:$0xf] }
  0x57   : > { %v469_v63 = vshll.u32 %v3107_v7, 16  ;;  %v592_v54 = vunpack.c.l.b16 %v272_v53  ;;  %v386_v41 = vor.u32 %v385_v33, %v381_v27  ;;  %v468_v5 = vrot.slane %v466_v55, 4  ;;  %3980 = vst [vmem:[#allocation15_spill] sm:$0xff] %v3136_v22 }
  0x58   : > { %v475_v6 = vshll.u32 %v3114_v30, 16  ;;  %v377_v14 = vrot.slane %v376_v60, 4  ;;  %v479_v8 = vshrl.u32 %v3114_v30, 16  ;;  %v485_v20 = vshll.u32 %v3119_v49, 16  ;;  %v3141_v60 = vld [vmem:[%s2866_s7 + $0xbc] sm:$0x1] }
  0x59   : > { %v471_v0 = vrot.slane %v469_v63, 5  ;;  %v3133_v45 = vpack.c.b16 %v592_v54, %v591_v59  ;;  %v387_v21 = vrot.slane %v386_v41, 4  ;;  %3981 = vst [vmem:[#allocation16_spill] sm:$0xff] %v3141_v60  ;;  %v562_v54 = vshrl.u32 %v3131_v17, 16 }
  0x5a   : > { %v477_v13 = vrot.slane %v475_v6, 5  ;;  %v382_v31 = vsel %vm2893_vm3, %v377_v14, %v381_v27  ;;  %v481_v55 = vrot.slane %v479_v8, 4  ;;  %v487_v53 = vrot.slane %v485_v20, 5 }
  0x5b   : > { %v472_v33 = vor.u32 %v471_v0, %v468_v5  ;;  %2402 = vmatmul.msk.bf16.gmra.mxu0 %vm635_vm4, %v3133_v45  ;;  %v392_v59 = vsel %vm2893_vm3, %v387_v21, %v391_v42  ;;  %v601_v63 = vunpack.c.l.b16 %v382_v31  ;;  %v565_v41 = vshll.u32 %v3131_v17, 16 }
  0x5c   : > { %v602_v6 = vunpack.c.l.b16 %v392_v59  ;;  %v482_v5 = vor.u32 %v481_v55, %v477_v13  ;;  %v571_v8 = vshll.u32 %v3136_v22, 16  ;;  %v564_v20 = vrot.slane %v562_v54, 4 }
  0x5d   : > { %v473_v27 = vrot.slane %v472_v33, 4  ;;  %v567_v14 = vrot.slane %v565_v41, 5  ;;  %v575_v0 = vshrl.u32 %v3136_v22, 16  ;;  %v581_v16 = vshll.u32 %v3141_v60, 16  ;;  %v3160_v33 = vld [vmem:[%s2866_s7 + $0x28] sm:$0xf] }
  0x5e   : > { %v3155_v42 = vpack.c.b16 %v602_v6, %v601_v63  ;;  %v483_v31 = vrot.slane %v482_v5, 4  ;;  %v573_v59 = vrot.slane %v571_v8, 5  ;;  %v1021_v55 = vrot.slane %v2913_v2, 5 }
  0x5f   : > { %v478_v21 = vsel %vm2893_vm3, %v473_v27, %v477_v13  ;;  %v568_v54 = vor.u32 %v567_v14, %v564_v20  ;;  %v577_v41 = vrot.slane %v575_v0, 4  ;;  %v583_v6 = vrot.slane %v581_v16, 5 }
  0x60   : > { %3982 = vst [vmem:[#allocation17_spill] sm:$0xff] %v3155_v42  ;;  %v609_v17 = vunpack.c.l.b16 %v478_v21  ;;  %2407 = vmatmul.msk.bf16.gmra.mxu1 %vm635_vm4, %v3155_v42  ;;  %v488_v63 = vsel %vm2893_vm3, %v483_v31, %v487_v53  ;;  %v274_v13 = vshrl.u32 %v3153_v40, 16  ;;  %v277_v27 = vshll.u32 %v3153_v40, 16 }
  0x61   : > { %v610_v5 = vunpack.c.l.b16 %v488_v63  ;;  %v569_v8 = vrot.slane %v568_v54, 4  ;;  %v578_v60 = vor.u32 %v577_v41, %v573_v59  ;;  %v283_v2 = vshll.u32 %v3160_v33, 16  ;;  %v2585_v54 = vld [vmem:[%s3924_s1 + $0xc] sm:$0x3]  ;;  %v2606_v41 = vld [vmem:[%s3924_s1 + $0xe] sm:$0x3] }
  0x62   : > { %v276_v20 = vrot.slane %v274_v13, 4  ;;  %v279_v14 = vrot.slane %v277_v27, 5  ;;  %v287_v0 = vshrl.u32 %v3160_v33, 16  ;;  %v293_v21 = vshll.u32 %v3164_v39, 16 }
  0x63   : > { %v3175_v22 = vpack.c.b16 %v610_v5, %v609_v17  ;;  %v574_v16 = vsel %vm2893_vm3, %v569_v8, %v573_v59  ;;  %v579_v53 = vrot.slane %v578_v60, 4  ;;  %v285_v31 = vrot.slane %v283_v2, 5  ;;  %v2568_v17 = vld [vmem:[%s3924_s1 + $0xa] sm:$0x3]  ;;  %v2624_v60 = vld [vmem:[%s3924_s1 + $0x10] sm:$0x3] }
  0x64   : > { %v617_v63 = vunpack.c.l.b16 %v574_v16  ;;  %v280_v13 = vor.u32 %v279_v14, %v276_v20  ;;  %v289_v27 = vrot.slane %v287_v0, 4  ;;  %v295_v7 = vrot.slane %v293_v21, 5 }
  0x65   : > { %3983 = vst [vmem:[#allocation18_spill] sm:$0xff] %v3175_v22  ;;  %2411 = vmatmul.msk.bf16.gmra.mxu2 %vm635_vm4, %v3175_v22  ;;  %v584_v59 = vsel %vm2893_vm3, %v579_v53, %v583_v6  ;;  %v2496_v5 = vrot.slane %v2903_v61, 9  ;;  %v1018_v0 = vrot.slane %v2910_v1, 5  ;;  %v1791_v21 = vsel %vm684_vm0, %v2585_v54, 0 }
  0x66   : > { %v618_v8 = vunpack.c.l.b16 %v584_v59  ;;  %v281_v2 = vrot.slane %v280_v13, 4  ;;  %v290_v20 = vor.u32 %v289_v27, %v285_v31  ;;  %v1947_v16 = vsel %vm684_vm0, %v2606_v41, 0  ;;  %1800 = vmatpush.bf16.msra.mxu2 %v1791_v21  ;;  %v2646_v21 = vld [vmem:[%s2866_s7 + $0xc] sm:$0xff] }
  0x67   : > { %v1657_v22 = vsel %vm684_vm0, %v2568_v17, 0  ;;  %v2087_v6 = vsel %vm684_vm0, %v2624_v60, 0  ;;  %v1019_v27 = vsel %vm3196_vm7, %v2496_v5, %v1018_v0  ;;  %1956 = vmatpush.bf16.msra.mxu3 %v1947_v16  ;;  %v1020_v54 = vrot.slane %v1018_v0, 4 }
  0x68   : > { %v3205_v53 = vpack.c.b16 %v618_v8, %v617_v63  ;;  %v286_v61 = vsel %vm2893_vm3, %v281_v2, %v285_v31  ;;  %v291_v13 = vrot.slane %v290_v20, 4  ;;  %1666 = vmatpush.bf16.msra.mxu1 %v1657_v22  ;;  %2096 = vmatpush.bf16.msra.mxu0 %v2087_v6  ;;  %v2497_v41 = vrot.slane %v2977_v35, 9  ;;  %v2645_v22 = vld [vmem:[%s2866_s7] sm:$0xff]  ;;  %v3242_v6 = vld [vmem:[%s2866_s7 + $0x18] sm:$0xff] }
  0x69   : > { %v593_v1 = vunpack.c.l.b16 %v286_v61  ;;  %v1130_v31 = vunpack.c.l.b16 %v1019_v27  ;;  %v1025_v17 = vrot.slane %v2984_v43, 5  ;;  %v1028_v60 = vrot.slane %v2987_v48, 5 }
  0x6a   : > { %2415 = vmatmul.msk.bf16.gmra.mxu3 %vm635_vm4, %v3205_v53  ;;  %v296_v63 = vsel %vm2893_vm3, %v291_v13, %v295_v7  ;;  %v1022_v5 = vsel %vm3196_vm7, %v1020_v54, %v1021_v55  ;;  %v1032_v16 = vrot.slane %v3072_v56, 5  ;;  %v2498_v61 = vrot.slane %v3067_v52, 9 }
  0x6b   : > { %v594_v59 = vunpack.c.l.b16 %v296_v63  ;;  %v1131_v8 = vunpack.c.l.b16 %v1022_v5  ;;  %v1026_v35 = vsel %vm3196_vm7, %v2497_v41, %v1025_v17  ;;  %v1027_v2 = vrot.slane %v1025_v17, 4  ;;  %v3262_v41 = vld [vmem:[%s2866_s7 + $0x24] sm:$0xff] }
  0x6c   : > { %v1132_v7 = vunpack.c.l.b16 %v1026_v35  ;;  %v1034_v13 = vrot.slane %v1032_v16, 4  ;;  %v1035_v27 = vrot.slane %v3075_v57, 5  ;;  %v1039_v57 = vrot.slane %v3160_v33, 5 }
  0x6d   : > { %v3223_v20 = vpack.c.b16 %v594_v59, %v593_v1  ;;  %v1162_v0 = vpack.c.b16 %v1131_v8, %v1130_v31  ;;  %v1029_v43 = vsel %vm3196_vm7, %v1027_v2, %v1028_v60  ;;  %v2499_v63 = vrot.slane %v3153_v40, 9  ;;  %v3284_v8 = vld [vmem:[%s2866_s7 + $0x30] sm:$0xff] }
  0x6e   : > { %v1133_v48 = vunpack.c.l.b16 %v1029_v43  ;;  %v1036_v56 = vsel %vm3196_vm7, %v1034_v13, %v1035_v27  ;;  %v1041_v31 = vrot.slane %v1039_v57, 4  ;;  %v1042_v17 = vrot.slane %v3164_v39, 5  ;;  %v3312_v27 = vld [vmem:[%s2866_s7 + $0x3c] sm:$0xff] }
  0x6f   : > { %2403 = vmatmul.msk.bf16.gmra.mxu0 %vm635_vm4, %v3223_v20  ;;  %v1135_v54 = vunpack.c.l.b16 %v1036_v56  ;;  %v1040_v60 = vsel %vm3196_vm7, %v2499_v63, %v1039_v57  ;;  %v1046_v39 = vrot.slane %v2872_v11, 5  ;;  %v2500_v35 = vrot.slane %v2869_v10, 9 }
  0x70   : > { %2480 = vmatmul.msk.bf16.vlgmr.msrb.gmra.mxu1 %vm635_vm4, %v2645_v22  ;;  %v3230_v55 = vpack.c.b16 %v1133_v48, %v1132_v7  ;;  %v1043_v33 = vsel %vm3196_vm7, %v1041_v31, %v1042_v17  ;;  %v1136_v59 = vunpack.c.l.b16 %v1040_v60  ;;  %v1049_v7 = vrot.slane %v2875_v12, 5 }
  0x71   : > { %v1137_v5 = vunpack.c.l.b16 %v1043_v33  ;;  %v1048_v2 = vrot.slane %v1046_v39, 4  ;;  %v1053_v13 = vrot.slane %v2932_v24, 5  ;;  %v2501_v56 = vrot.slane %v2929_v23, 9 }
  0x73   : > { %v3276_v40 = vpack.c.b16 %v1137_v5, %v1136_v59  ;;  %v1050_v11 = vsel %vm3196_vm7, %v1048_v2, %v1049_v7  ;;  %v1054_v24 = vsel %vm3196_vm7, %v2501_v56, %v1053_v13  ;;  %v1060_v5 = vrot.slane %v3002_v3, 5 }
  0x74   : > { %v1140_v23 = vunpack.c.l.b16 %v1054_v24  ;;  %v2502_v7 = vrot.slane %v2997_v58, 9  ;;  %v1067_v24 = vrot.slane %v3092_v32, 5 }
  0x75   : > { %2513 = vmatmul.msk.bf16.vlgmr.msrb.gmra.mxu2 %vm635_vm4, %v1162_v0  ;;  %v1047_v0 = vsel %vm3196_vm7, %v2500_v35, %v1046_v39  ;;  %v3346_v35 = vld [vmem:[%s2866_s7 + $0x48] sm:$0xff] }
  0x76   : > { %v1138_v48 = vunpack.c.l.b16 %v1047_v0  ;;  %3988 = vst [vmem:[#allocation21_spill] sm:$0xff] %v3346_v35  ;;  %v1062_v0 = vrot.slane %v1060_v5, 4 }
  0x7a   : > { %2534 = vmatmul.msk.bf16.vlgmr.msrb.gmra.mxu3 %vm635_vm4, %v2646_v21 }
  0x7f   : > { %2551 = vmatmul.msk.bf16.vlgmr.msrb.gmra.mxu0 %vm635_vm4, %v3045_v9  ;;  %v1033_v9 = vsel %vm3196_vm7, %v2498_v61, %v1032_v16 }
  0x80   : > { %2481 = vmatmul.msk.bf16.gmra.mxu1 %vm635_vm4, %v2646_v21  ;;  %v1134_v1 = vunpack.c.l.b16 %v1033_v9  ;;  %v1139_v21 = vunpack.c.l.b16 %v1050_v11  ;;  %v1063_v11 = vrot.slane %v3009_v15, 5 }
  0x82   : > { %v3256_v52 = vpack.c.b16 %v1135_v54, %v1134_v1  ;;  %v3304_v12 = vpack.c.b16 %v1139_v21, %v1138_v48  ;;  %v1055_v1 = vrot.slane %v1053_v13, 4  ;;  %v1056_v54 = vrot.slane %v2937_v29, 5 }
  0x83   : > { %v1061_v21 = vsel %vm3196_vm7, %v2502_v7, %v1060_v5  ;;  %v1064_v13 = vsel %vm3196_vm7, %v1062_v0, %v1063_v11  ;;  %v2503_v5 = vrot.slane %v3087_v26, 9  ;;  %v1069_v7 = vrot.slane %v1067_v24, 4 }
  0x84   : > { %v1057_v63 = vsel %vm3196_vm7, %v1055_v1, %v1056_v54  ;;  %v1142_v56 = vunpack.c.l.b16 %v1061_v21  ;;  %v1143_v1 = vunpack.c.l.b16 %v1064_v13  ;;  %v1070_v0 = vrot.slane %v3097_v46, 5 }
  0x85   : > { %2514 = vmatmul.msk.bf16.gmra.mxu2 %vm635_vm4, %v3230_v55  ;;  %v1141_v60 = vunpack.c.l.b16 %v1057_v63  ;;  %v1068_v32 = vsel %vm3196_vm7, %v2503_v5, %v1067_v24  ;;  %v1074_v5 = vrot.slane %v2884_v19, 5 }
  0x86   : > { %v3370_v54 = vpack.c.b16 %v1143_v1, %v1142_v56  ;;  %v1071_v13 = vsel %vm3196_vm7, %v1069_v7, %v1070_v0  ;;  %v1144_v56 = vunpack.c.l.b16 %v1068_v32  ;;  %v2706_v32 = vld [vmem:[%s2866_s7 + $0x68] sm:$0x1] }
  0x87   : > { %v3336_v33 = vpack.c.b16 %v1141_v60, %v1140_v23  ;;  %v3380_v60 = vld [vmem:[%s2866_s7 + $0x54] sm:$0xff]  ;;  %v1145_v46 = vunpack.c.l.b16 %v1071_v13  ;;  %v1077_v13 = vrot.slane %v2706_v32, 5 }
  0x88   : > { %3991 = vst [vmem:[#allocation24_spill] sm:$0xff] %v3370_v54 }
  0x89   : > { %3992 = vst [vmem:[#allocation25_spill] sm:$0xff] %v3380_v60 }
  0x8a   : > { %2535 = vmatmul.msk.bf16.gmra.mxu3 %vm635_vm4, %v3242_v6 }
  0x8f   : > { %2552 = vmatmul.msk.bf16.gmra.mxu0 %vm635_vm4, %v3133_v45 }
  0x90   : > { %2482 = vmatmul.msk.bf16.gmra.mxu1 %vm635_vm4, %v3242_v6 }
  0x95   : > { %2515 = vmatmul.msk.bf16.gmra.mxu2 %vm635_vm4, %v3256_v52 }
  0x9a   : > { %2536 = vmatmul.msk.bf16.gmra.mxu3 %vm635_vm4, %v3262_v41 }
  0x9f   : > { %2553 = vmatmul.msk.bf16.gmra.mxu0 %vm635_vm4, %v3223_v20 }
  0xa0   : > { %2483 = vmatmul.msk.bf16.gmra.mxu1 %vm635_vm4, %v3262_v41 }
  0xa5   : > { %v3279_v22 = vpop.f32.mrf.mxu1  ;;  %2516 = vmatmul.msk.bf16.gmra.mxu2 %vm635_vm4, %v3276_v40 }
  0xaa   : > { %2537 = vmatmul.msk.bf16.gmra.mxu3 %vm635_vm4, %v3284_v8 }
  0xad   : > { %v3294_v43 = vpop.f32.mrf.mxu1 }
  0xaf   : > { %v3296_v16 = vpop.f32.mrf.mxu2  ;;  %2554 = vmatmul.msk.bf16.gmra.mxu0 %vm635_vm4, %v2905_v62 }
  0xb0   : > { %2484 = vmatmul.msk.bf16.gmra.mxu1 %vm635_vm4, %v3284_v8 }
  0xb2   : > { %v3302_v10 = vpop.f32.mrf.mxu0 }
  0xb3   : > { %v3306_v61 = vpop.f32.mrf.mxu3 }
  0xb4   : > { %3986 = vst [vmem:[#allocation19_spill] sm:$0xff] %v3306_v61 }
  0xb5   : > { %2517 = vmatmul.msk.bf16.gmra.mxu2 %vm635_vm4, %v3304_v12 }
  0xb7   : > { %v3314_v9 = vpop.f32.mrf.mxu1  ;;  %v3318_v57 = vpop.f32.mrf.mxu2 }
  0xba   : > { %2538 = vmatmul.msk.bf16.gmra.mxu3 %vm635_vm4, %v3312_v27  ;;  %v3326_v31 = vpop.f32.mrf.mxu0 }
  0xbb   : > { %v3328_v17 = vpop.f32.mrf.mxu3 }
  0xbc   : > { %3987 = vst [vmem:[#allocation20_spill] sm:$0xff] %v3328_v17 }
  0xbf   : > { %2555 = vmatmul.msk.bf16.gmra.mxu0 %vm635_vm4, %v2979_v37  ;;  %v3332_v29 = vpop.f32.mrf.mxu1 }
  0xc0   : > { %2485 = vmatmul.msk.bf16.gmra.mxu1 %vm635_vm4, %v3312_v27 }
  0xc2   : > { %v3338_v59 = vpop.f32.mrf.mxu2 }
  0xc5   : > { %2518 = vmatmul.msk.bf16.gmra.mxu2 %vm635_vm4, %v3336_v33 }
  0xc6   : > { %v3341_v39 = vpop.f32.mrf.mxu0 }
  0xc7   : > { %v3348_v2 = vpop.f32.mrf.mxu3 }
  0xc8   : > { %3989 = vst [vmem:[#allocation22_spill] sm:$0xff] %v3348_v2 }
  0xc9   : > { %v3352_v48 = vpop.f32.mrf.mxu1 }
  0xca   : > { %2539 = vmatmul.msk.bf16.gmra.mxu3 %vm635_vm4, %v3346_v35  ;;  %v3356_v3 = vpop.f32.mrf.mxu2 }
  0xce   : > { %v3362_v58 = vpop.f32.mrf.mxu0 }
  0xcf   : > { %2556 = vmatmul.msk.bf16.gmra.mxu0 %vm635_vm4, %v3064_v44  ;;  %v3366_v15 = vpop.f32.mrf.mxu3 }
  0xd0   : > { %3990 = vst [vmem:[#allocation23_spill] sm:$0xff] %v3366_v15  ;;  %2486 = vmatmul.msk.bf16.gmra.mxu1 %vm635_vm4, %v3346_v35  ;;  %v3415_v15 = vld [vmem:[%s2866_s7 + $0x60] sm:$0xff] }
  0xd1   : > { %v3373_v63 = vpop.f32.mrf.mxu1  ;;  %3996 = vst [vmem:[#allocation29_spill] sm:$0xff] %v3415_v15 }
  0xd5   : > { %v3375_v23 = vpop.f32.mrf.mxu2  ;;  %2519 = vmatmul.msk.bf16.gmra.mxu2 %vm635_vm4, %v3370_v54 }
  0xd8   : > { %v3384_v11 = vpop.f32.mrf.mxu0 }
  0xd9   : > { %v3386_v21 = vpop.f32.mrf.mxu3 }
  0xda   : > { %3993 = vst [vmem:[#allocation26_spill] sm:$0xff] %v3386_v21  ;;  %2540 = vmatmul.msk.bf16.gmra.mxu3 %vm635_vm4, %v3380_v60  ;;  %v3402_v21 = vpack.c.b16 %v1145_v46, %v1144_v56 }
  0xdc   : > { %3994 = vst [vmem:[#allocation27_spill] sm:$0xff] %v3402_v21 }
  0xdd   : > { %v3394_v26 = vpop.f32.mrf.mxu1  ;;  %v3396_v1 = vpop.f32.mrf.mxu2 }
  0xdf   : > { %2557 = vmatmul.msk.bf16.gmra.mxu0 %vm635_vm4, %v3155_v42  ;;  %v2707_v42 = vld [vmem:[%s2866_s7 + $0x60] sm:$0xf] }
  0xe0   : > { %2487 = vmatmul.msk.bf16.gmra.mxu1 %vm635_vm4, %v3380_v60  ;;  %v3404_v24 = vpop.f32.mrf.mxu0  ;;  %v2504_v2 = vrot.slane %v2707_v42, 9  ;;  %v1076_v60 = vrot.slane %v1074_v5, 4 }
  0xe1   : > { %v3407_v7 = vpop.f32.mrf.mxu3 }
  0xe2   : > { %3995 = vst [vmem:[#allocation28_spill] sm:$0xff] %v3407_v7  ;;  %v1075_v19 = vsel %vm3196_vm7, %v2504_v2, %v1074_v5  ;;  %v1078_v46 = vsel %vm3196_vm7, %v1076_v60, %v1077_v13  ;;  %v1081_v60 = vrot.slane %v2952_v47, 5 }
  0xe3   : > { %v1146_v17 = vunpack.c.l.b16 %v1075_v19  ;;  %v1147_v42 = vunpack.c.l.b16 %v1078_v46  ;;  %v3448_v19 = vld [vmem:[%s2866_s7 + $0x6c] sm:$0xff] }
  0xe5   : > { %2520 = vmatmul.msk.bf16.gmra.mxu2 %vm635_vm4, %v3402_v21  ;;  %v3411_v0 = vpop.f32.mrf.mxu1  ;;  %v3437_v2 = vpack.c.b16 %v1147_v42, %v1146_v17  ;;  %v1083_v17 = vrot.slane %v1081_v60, 4 }
  0xe7   : > { %3998 = vst [vmem:[#allocation31_spill] sm:$0xff] %v3437_v2 }
  0xe8   : > { %v3418_v56 = vpop.f32.mrf.mxu2 }
  0xea   : > { %2541 = vmatmul.msk.bf16.gmra.mxu3 %vm635_vm4, %v3415_v15 }
  0xec   : > { %v3426_v7 = vpop.f32.mrf.mxu0 }
  0xed   : > { %v3428_v32 = vpop.f32.mrf.mxu3  ;;  %v917_v21 = vpop.f32.mrf.mxu1 }
  0xee   : > { %3997 = vst [vmem:[#allocation30_spill] sm:$0xff] %v3428_v32  ;;  %v918_v54 = vadd.f32 %v917_v21, %v3302_v10  ;;  %v1084_v21 = vrot.slane %v2959_v51, 5  ;;  %v2505_v32 = vrot.slane %v2945_v38, 9 }
  0xef   : > { %2558 = vmatmul.msk.bf16.gmra.mxu0 %vm635_vm4, %v2924_v18 }
  0xf0   : > { %v3433_v44 = vpop.f32.mrf.mxu2  ;;  %2488 = vmatmul.msk.bf16.gmra.mxu1 %vm635_vm4, %v3415_v15  ;;  %v1082_v47 = vsel %vm3196_vm7, %v2505_v32, %v1081_v60 }
  0xf1   : > { %v1148_v61 = vunpack.c.l.b16 %v1082_v47 }
  0xf4   : > { %v3440_v5 = vpop.f32.mrf.mxu0 }
  0xf5   : > { %v3442_v13 = vpop.f32.mrf.mxu3  ;;  %2521 = vmatmul.msk.bf16.gmra.mxu2 %vm635_vm4, %v3437_v2  ;;  %v919_v10 = vpop.f32.mrf.mxu1 }
  0xf6   : > { %3999 = vst [vmem:[#allocation32_spill] sm:$0xff] %v3442_v13  ;;  %v920_v46 = vadd.f32 %v919_v10, %v3326_v31  ;;  %v1085_v13 = vsel %vm3196_vm7, %v1083_v17, %v1084_v21  ;;  %v1088_v21 = vrot.slane %v3024_v34, 5 }
  0xf7   : > { %v1149_v35 = vunpack.c.l.b16 %v1085_v13  ;;  %v1091_v13 = vrot.slane %v3031_v50, 5 }
  0xf8   : > { %v1238_v42 = vpop.f32.mrf.mxu2 }
  0xf9   : > { %v1318_v18 = vadd.f32 %v1238_v42, %v918_v54  ;;  %v3465_v10 = vpack.c.b16 %v1149_v35, %v1148_v61  ;;  %v3472_v42 = vld [vmem:[%s2866_s7 + $0x78] sm:$0xff] }
  0xfa   : > { %2542 = vmatmul.msk.bf16.gmra.mxu3 %vm635_vm4, %v3448_v19 }
  0xfc   : > { %v1528_v2 = vpop.f32.mrf.mxu0 }
  0xfd   : > { %v1372_v51 = vpop.f32.mrf.mxu3  ;;  %v922_v15 = vpop.f32.mrf.mxu1 }
  0xfe   : > { %v1452_v31 = vadd.f32 %v1372_v51, %v1318_v18  ;;  %v923_v38 = vadd.f32 %v922_v15, %v3341_v39 }
  0xff   : > { %2559 = vmatmul.msk.bf16.gmra.mxu0 %vm635_vm4, %v3004_v4 }
 0x100   : > { %v1240_v54 = vpop.f32.mrf.mxu2  ;;  %2489 = vmatmul.msk.bf16.gmra.mxu1 %vm635_vm4, %v3448_v19  ;;  %v3463_v32 = vadd.f32 %v1528_v2, %v1452_v31  ;;  %v2506_v2 = vrot.slane %v3020_v28, 9 }
 0x101   : > { %v1319_v60 = vadd.f32 %v1240_v54, %v920_v46  ;;  %v1090_v46 = vrot.slane %v1088_v21, 4 }
 0x102   : > { %v1089_v50 = vsel %vm3196_vm7, %v2506_v2, %v1088_v21 }
 0x103   : > { %v1092_v51 = vsel %vm3196_vm7, %v1090_v46, %v1091_v13  ;;  %v1098_v46 = vrot.slane %v3119_v49, 5 }
 0x104   : > { %v1530_v17 = vpop.f32.mrf.mxu0 }
 0x105   : > { %v1374_v18 = vpop.f32.mrf.mxu3  ;;  %2522 = vmatmul.msk.bf16.gmra.mxu2 %vm635_vm4, %v3465_v10  ;;  %v924_v39 = vpop.f32.mrf.mxu1 }
 0x106   : > { %v1453_v15 = vadd.f32 %v1374_v18, %v1319_v60  ;;  %v925_v47 = vadd.f32 %v924_v39, %v3362_v58  ;;  %v1150_v58 = vunpack.c.l.b16 %v1089_v50  ;;  %v1151_v18 = vunpack.c.l.b16 %v1092_v51  ;;  %v3498_v50 = vld [vmem:[%s2866_s7 + $0x84] sm:$0xff] }
 0x108   : > { %v1243_v61 = vpop.f32.mrf.mxu2  ;;  %v3476_v35 = vadd.f32 %v1530_v17, %v1453_v15  ;;  %v3491_v13 = vpack.c.b16 %v1151_v18, %v1150_v58  ;;  %v1095_v15 = vrot.slane %v3114_v30, 5 }
 0x109   : > { %v1320_v34 = vadd.f32 %v1243_v61, %v923_v38 }
 0x10a   : > { %2543 = vmatmul.msk.bf16.gmra.mxu3 %vm635_vm4, %v3472_v42 }
 0x10c   : > { %v1533_v31 = vpop.f32.mrf.mxu0 }
 0x10d   : > { %v1377_v54 = vpop.f32.mrf.mxu3  ;;  %v927_v60 = vpop.f32.mrf.mxu1 }
 0x10e   : > { %v1454_v28 = vadd.f32 %v1377_v54, %v1320_v34  ;;  %v928_v17 = vadd.f32 %v927_v60, %v3384_v11 }
 0x10f   : > { %2560 = vmatmul.msk.bf16.gmra.mxu0 %vm635_vm4, %v3089_v25 }
 0x110   : > { %v1245_v38 = vpop.f32.mrf.mxu2  ;;  %2490 = vmatmul.msk.bf16.gmra.mxu1 %vm635_vm4, %v3472_v42  ;;  %v3489_v21 = vadd.f32 %v1533_v31, %v1454_v28  ;;  %v4000_v31 = vld [vmem:[#allocation12_spill] sm:$0xff] }
 0x111   : > { %v1321_v39 = vadd.f32 %v1245_v38, %v925_v47  ;;  %v2507_v54 = vrot.slane %v4000_v31, 9  ;;  %v1097_v47 = vrot.slane %v1095_v15, 4 }
 0x113   : > { %v1096_v49 = vsel %vm3196_vm7, %v2507_v54, %v1095_v15  ;;  %v1099_v18 = vsel %vm3196_vm7, %v1097_v47, %v1098_v46  ;;  %v2708_v54 = vld [vmem:[%s2866_s7 + $0x94] sm:$0xf] }
 0x114   : > { %v1535_v2 = vpop.f32.mrf.mxu0  ;;  %v1102_v47 = vrot.slane %v2708_v54, 5 }
 0x115   : > { %v1379_v61 = vpop.f32.mrf.mxu3  ;;  %2523 = vmatmul.msk.bf16.gmra.mxu2 %vm635_vm4, %v3491_v13  ;;  %v929_v11 = vpop.f32.mrf.mxu1 }
 0x116   : > { %v1455_v34 = vadd.f32 %v1379_v61, %v1321_v39  ;;  %v930_v51 = vadd.f32 %v929_v11, %v3404_v24  ;;  %v1152_v39 = vunpack.c.l.b16 %v1096_v49  ;;  %v1153_v61 = vunpack.c.l.b16 %v1099_v18 }
 0x118   : > { %v1248_v60 = vpop.f32.mrf.mxu2  ;;  %v3502_v58 = vadd.f32 %v1535_v2, %v1455_v34  ;;  %v3517_v31 = vpack.c.b16 %v1153_v61, %v1152_v39 }
 0x119   : > { %v1322_v30 = vadd.f32 %v1248_v60, %v928_v17  ;;  %v4002_v17 = vld [vmem:[#allocation18_spill] sm:$0xff] }
 0x11a   : > { %4001 = vst [vmem:[#allocation12_spill] sm:$0xff] %v3502_v58  ;;  %2544 = vmatmul.msk.bf16.gmra.mxu3 %vm635_vm4, %v3498_v50 }
 0x11b   : > { %4004 = vst [vmem:[#allocation34_spill] sm:$0xff] %v3517_v31 }
 0x11c   : > { %v1538_v28 = vpop.f32.mrf.mxu0 }
 0x11d   : > { %v1382_v24 = vpop.f32.mrf.mxu3  ;;  %v932_v38 = vpop.f32.mrf.mxu1 }
 0x11e   : > { %v1456_v11 = vadd.f32 %v1382_v24, %v1322_v30  ;;  %v933_v2 = vadd.f32 %v932_v38, %v3426_v7  ;;  %v2709_v30 = vld [vmem:[%s2866_s7 + $0x98] sm:$0x1]  ;;  %v3524_v38 = vld [vmem:[%s2866_s7 + $0x90] sm:$0xff] }
 0x11f   : > { %2561 = vmatmul.msk.bf16.gmra.mxu0 %vm635_vm4, %v4002_v17  ;;  %v1105_v49 = vrot.slane %v2709_v30, 5  ;;  %4005 = vst [vmem:[#allocation35_spill] sm:$0xff] %v3524_v38 }
 0x120   : > { %v1250_v34 = vpop.f32.mrf.mxu2  ;;  %2491 = vmatmul.msk.bf16.gmra.mxu1 %vm635_vm4, %v3498_v50  ;;  %v3515_v15 = vadd.f32 %v1538_v28, %v1456_v11  ;;  %v2710_v28 = vld [vmem:[%s2866_s7 + $0x90] sm:$0xf] }
 0x121   : > { %v1323_v46 = vadd.f32 %v1250_v34, %v930_v51  ;;  %v2508_v11 = vrot.slane %v2710_v28, 9  ;;  %v1104_v51 = vrot.slane %v1102_v47, 4 }
 0x122   : > { %4003 = vst [vmem:[#allocation33_spill] sm:$0xff] %v3515_v15  ;;  %v2713_v15 = vld [vmem:[%s2866_s7 + $0x9c] sm:$0xf] }
 0x123   : > { %v1103_v54 = vsel %vm3196_vm7, %v2508_v11, %v1102_v47  ;;  %v2711_v11 = vld [vmem:[%s2866_s7 + $0xa0] sm:$0xf] }
 0x124   : > { %v1540_v60 = vpop.f32.mrf.mxu0 }
 0x125   : > { %v1384_v7 = vpop.f32.mrf.mxu3  ;;  %2524 = vmatmul.msk.bf16.gmra.mxu2 %vm635_vm4, %v3517_v31  ;;  %v934_v18 = vpop.f32.mrf.mxu1 }
 0x126   : > { %v1457_v24 = vadd.f32 %v1384_v7, %v1323_v46  ;;  %v935_v17 = vadd.f32 %v934_v18, %v3440_v5  ;;  %v1106_v46 = vsel %vm3196_vm7, %v1104_v51, %v1105_v49  ;;  %v1154_v18 = vunpack.c.l.b16 %v1103_v54 }
 0x127   : > { %v1155_v28 = vunpack.c.l.b16 %v1106_v46  ;;  %v1109_v51 = vrot.slane %v2711_v11, 5  ;;  %v2712_v46 = vld [vmem:[%s2866_s7 + $0xa4] sm:$0x1] }
 0x128   : > { %v1253_v39 = vpop.f32.mrf.mxu2  ;;  %v3528_v61 = vadd.f32 %v1540_v60, %v1457_v24  ;;  %v4007_v60 = vld [vmem:[#allocation6_spill] sm:$0xff] }
 0x129   : > { %v1324_v34 = vadd.f32 %v1253_v39, %v933_v2  ;;  %v3542_v49 = vpack.c.b16 %v1155_v28, %v1154_v18 }
 0x12a   : > { %4006 = vst [vmem:[#allocation36_spill] sm:$0xff] %v3528_v61  ;;  %2545 = vmatmul.msk.bf16.gmra.mxu3 %vm635_vm4, %v3524_v38  ;;  %v3549_v61 = vld [vmem:[%s2866_s7 + $0x9c] sm:$0xff] }
 0x12b   : > { %4009 = vst [vmem:[#allocation38_spill] sm:$0xff] %v3542_v49 }
 0x12c   : > { %v1543_v30 = vpop.f32.mrf.mxu0  ;;  %4010 = vst [vmem:[#allocation39_spill] sm:$0xff] %v3549_v61 }
 0x12d   : > { %v1387_v7 = vpop.f32.mrf.mxu3  ;;  %v937_v5 = vpop.f32.mrf.mxu1 }
 0x12e   : > { %v1458_v31 = vadd.f32 %v1387_v7, %v1324_v34  ;;  %v1112_v7 = vrot.slane %v2712_v46, 5 }
 0x12f   : > { %2562 = vmatmul.msk.bf16.gmra.mxu0 %vm635_vm4, %v4007_v60 }
 0x130   : > { %v1255_v2 = vpop.f32.mrf.mxu2  ;;  %2492 = vmatmul.msk.bf16.gmra.mxu1 %vm635_vm4, %v3524_v38  ;;  %v3540_v47 = vadd.f32 %v1543_v30, %v1458_v31  ;;  %v2509_v38 = vrot.slane %v2713_v15, 9  ;;  %v1111_v31 = vrot.slane %v1109_v51, 4 }
 0x131   : > { %v1325_v24 = vadd.f32 %v1255_v2, %v935_v17  ;;  %v938_v17 = vadd.f32 %v937_v5, %v3279_v22  ;;  %v4012_v5 = vld [vmem:[#allocation7_spill] sm:$0xff] }
 0x132   : > { %4008 = vst [vmem:[#allocation37_spill] sm:$0xff] %v3540_v47  ;;  %v1110_v2 = vsel %vm3196_vm7, %v2509_v38, %v1109_v51 }
 0x133   : > { %v1156_v15 = vunpack.c.l.b16 %v1110_v2 }
 0x134   : > { %v1545_v39 = vpop.f32.mrf.mxu0 }
 0x135   : > { %v1389_v54 = vpop.f32.mrf.mxu3  ;;  %2525 = vmatmul.msk.bf16.gmra.mxu2 %vm635_vm4, %v3542_v49  ;;  %v939_v34 = vpop.f32.mrf.mxu1 }
 0x136   : > { %v1459_v60 = vadd.f32 %v1389_v54, %v1325_v24  ;;  %v1113_v24 = vsel %vm3196_vm7, %v1111_v31, %v1112_v7  ;;  %v4015_v31 = vld [vmem:[#allocation9_spill] sm:$0xff] }
 0x137   : > { %v1157_v49 = vunpack.c.l.b16 %v1113_v24  ;;  %v4016_v24 = vld [vmem:[#allocation10_spill] sm:$0xff] }
 0x138   : > { %v1258_v30 = vpop.f32.mrf.mxu2  ;;  %v3553_v18 = vadd.f32 %v1545_v39, %v1459_v60  ;;  %v940_v60 = vadd.f32 %v939_v34, %v3294_v43  ;;  %v3575_v34 = vld [vmem:[%s2866_s7 + $0xa8] sm:$0xff] }
 0x139   : > { %v1326_v28 = vadd.f32 %v1258_v30, %v938_v17  ;;  %v3568_v7 = vpack.c.b16 %v1157_v49, %v1156_v15  ;;  %v1116_v17 = vrot.slane %v4015_v31, 5  ;;  %4017 = vst [vmem:[#allocation9_spill] sm:$0xff] %v3575_v34 }
 0x13a   : > { %4011 = vst [vmem:[#allocation40_spill] sm:$0xff] %v3553_v18  ;;  %2546 = vmatmul.msk.bf16.gmra.mxu3 %vm635_vm4, %v3549_v61 }
 0x13b   : > { %4014 = vst [vmem:[#allocation42_spill] sm:$0xff] %v3568_v7 }
 0x13c   : > { %v1548_v11 = vpop.f32.mrf.mxu0 }
 0x13d   : > { %v1392_v54 = vpop.f32.mrf.mxu3  ;;  %v942_v46 = vpop.f32.mrf.mxu1 }
 0x13e   : > { %v1460_v22 = vadd.f32 %v1392_v54, %v1326_v28  ;;  %v1119_v54 = vrot.slane %v4016_v24, 5 }
 0x13f   : > { %2563 = vmatmul.msk.bf16.gmra.mxu0 %vm635_vm4, %v4012_v5  ;;  %v4018_v5 = vld [vmem:[#allocation8_spill] sm:$0xff] }
 0x140   : > { %v1260_v39 = vpop.f32.mrf.mxu2  ;;  %2493 = vmatmul.msk.bf16.gmra.mxu1 %vm635_vm4, %v3549_v61  ;;  %v3566_v38 = vadd.f32 %v1548_v11, %v1460_v22  ;;  %v2510_v18 = vrot.slane %v4018_v5, 9  ;;  %v1118_v11 = vrot.slane %v1116_v17, 4  ;;  %v943_v22 = vadd.f32 %v942_v46, %v3314_v9 }
 0x141   : > { %v1327_v51 = vadd.f32 %v1260_v39, %v940_v60 }
 0x142   : > { %4013 = vst [vmem:[#allocation41_spill] sm:$0xff] %v3566_v38  ;;  %v1117_v39 = vsel %vm3196_vm7, %v2510_v18, %v1116_v17  ;;  %v3593_v18 = vld [vmem:[%s2866_s7 + $0xc0] sm:$0xf] }
 0x143   : > { %v1158_v24 = vunpack.c.l.b16 %v1117_v39  ;;  %4021 = vst [vmem:[#allocation8_spill] sm:$0xff] %v3593_v18  ;;  %v1485_v39 = vshrl.u32 %v3593_v18, 16 }
 0x144   : > { %v1550_v30 = vpop.f32.mrf.mxu0 }
 0x145   : > { %v1394_v2 = vpop.f32.mrf.mxu3  ;;  %2526 = vmatmul.msk.bf16.gmra.mxu2 %vm635_vm4, %v3568_v7  ;;  %v944_v28 = vpop.f32.mrf.mxu1  ;;  %v4020_v7 = vld [vmem:[#allocation13_spill] sm:$0xff] }
 0x146   : > { %v1461_v43 = vadd.f32 %v1394_v2, %v1327_v51  ;;  %v1120_v51 = vsel %vm3196_vm7, %v1118_v11, %v1119_v54 }
 0x147   : > { %v1159_v9 = vunpack.c.l.b16 %v1120_v51 }
 0x148   : > { %v1263_v49 = vpop.f32.mrf.mxu2  ;;  %v3579_v15 = vadd.f32 %v1550_v30, %v1461_v43  ;;  %v945_v30 = vadd.f32 %v944_v28, %v3332_v29  ;;  %v1488_v29 = vshll.u32 %v3593_v18, 16 }
 0x149   : > { %v1328_v60 = vadd.f32 %v1263_v49, %v943_v22  ;;  %v3597_v11 = vpack.c.b16 %v1159_v9, %v1158_v24  ;;  %v3600_v22 = vld [vmem:[%s2866_s7 + $0xc4] sm:$0xf]  ;;  %v4025_v49 = vld [vmem:[#allocation15_spill] sm:$0xff]  ;;  %v4026_v24 = vld [vmem:[#allocation16_spill] sm:$0xff] }
 0x14a   : > { %4019 = vst [vmem:[#allocation10_spill] sm:$0xff] %v3579_v15  ;;  %2547 = vmatmul.msk.bf16.gmra.mxu3 %vm635_vm4, %v3575_v34  ;;  %v1494_v28 = vshll.u32 %v3600_v22, 16  ;;  %v1126_v9 = vrot.slane %v4026_v24, 5  ;;  %v1487_v15 = vrot.slane %v1485_v39, 4  ;;  %v1490_v38 = vrot.slane %v1488_v29, 5 }
 0x14b   : > { %4023 = vst [vmem:[#allocation44_spill] sm:$0xff] %v3597_v11 }
 0x14c   : > { %v1553_v31 = vpop.f32.mrf.mxu0  ;;  %4024 = vst [vmem:[#allocation45_spill] sm:$0xff] %v3600_v22 }
 0x14d   : > { %v1397_v5 = vpop.f32.mrf.mxu3  ;;  %v947_v2 = vpop.f32.mrf.mxu1 }
 0x14e   : > { %v1462_v46 = vadd.f32 %v1397_v5, %v1328_v60  ;;  %v1123_v60 = vrot.slane %v4025_v49, 5  ;;  %v1498_v5 = vshrl.u32 %v3600_v22, 16  ;;  %v948_v18 = vadd.f32 %v947_v2, %v3352_v48 }
 0x14f   : > { %2564 = vmatmul.msk.bf16.gmra.mxu0 %vm635_vm4, %v4020_v7  ;;  %v1496_v22 = vrot.slane %v1494_v28, 5  ;;  %v1491_v2 = vor.u32 %v1490_v38, %v1487_v15 }
 0x150   : > { %v1265_v43 = vpop.f32.mrf.mxu2  ;;  %2494 = vmatmul.msk.bf16.gmra.mxu1 %vm635_vm4, %v3575_v34  ;;  %v3595_v17 = vadd.f32 %v1553_v31, %v1462_v46  ;;  %v1500_v61 = vrot.slane %v1498_v5, 4 }
 0x151   : > { %v1329_v54 = vadd.f32 %v1265_v43, %v945_v30  ;;  %v3611_v30 = vld [vmem:[%s2866_s7 + $0xb4] sm:$0xff]  ;;  %v4027_v43 = vld [vmem:[#allocation14_spill] sm:$0xff] }
 0x152   : > { %4022 = vst [vmem:[#allocation43_spill] sm:$0xff] %v3595_v17  ;;  %v2511_v49 = vrot.slane %v4027_v43, 9  ;;  %v1125_v17 = vrot.slane %v1123_v60, 4  ;;  %v1501_v39 = vor.u32 %v1500_v61, %v1496_v22 }
 0x154   : > { %v1555_v51 = vpop.f32.mrf.mxu0  ;;  %v1502_v38 = vrot.slane %v1501_v39, 4 }
 0x155   : > { %v1399_v7 = vpop.f32.mrf.mxu3  ;;  %2527 = vmatmul.msk.bf16.gmra.mxu2 %vm635_vm4, %v3597_v11  ;;  %v949_v31 = vpop.f32.mrf.mxu1  ;;  %v3618_v11 = vld [vmem:[%s2866_s7 + $0xc8] sm:$0x1] }
 0x156   : > { %v1463_v46 = vadd.f32 %v1399_v7, %v1329_v54  ;;  %v1124_v7 = vsel %vm3196_vm7, %v2511_v49, %v1123_v60  ;;  %v1127_v54 = vsel %vm3196_vm7, %v1125_v17, %v1126_v9  ;;  %v1504_v29 = vshll.u32 %v3618_v11, 16 }
 0x157   : > { %v1160_v5 = vunpack.c.l.b16 %v1124_v7  ;;  %v950_v24 = vadd.f32 %v949_v31, %v3373_v63  ;;  %v1492_v17 = vrot.slane %v1491_v2, 4 }
 0x158   : > { %v1268_v34 = vpop.f32.mrf.mxu2  ;;  %v3615_v47 = vadd.f32 %v1555_v51, %v1463_v46  ;;  %v1506_v61 = vrot.slane %v1504_v29, 5 }
 0x159   : > { %v1330_v58 = vadd.f32 %v1268_v34, %v948_v18  ;;  %v1161_v34 = vunpack.c.l.b16 %v1127_v54  ;;  %v3643_v54 = vld [vmem:[%s2866_s7 + $0xc0] sm:$0xff] }
 0x15a   : > { %2548 = vmatmul.msk.bf16.gmra.mxu3 %vm635_vm4, %v3611_v30  ;;  %v1507_v63 = vsel %vm2893_vm3, %v1502_v38, %v1506_v61 }
 0x15b   : > { %v3634_v46 = vpack.c.b16 %v1161_v34, %v1160_v5  ;;  %v1511_v39 = vunpack.c.l.b16 %v1507_v63 }
 0x15c   : > { %v1558_v48 = vpop.f32.mrf.mxu0 }
 0x15d   : > { %v1402_v28 = vpop.f32.mrf.mxu3  ;;  %v952_v51 = vpop.f32.mrf.mxu1 }
 0x15e   : > { %v1464_v18 = vadd.f32 %v1402_v28, %v1330_v58  ;;  %v1497_v58 = vsel %vm2893_vm3, %v1492_v17, %v1496_v22 }
 0x15f   : > { %2565 = vmatmul.msk.bf16.gmra.mxu0 %vm635_vm4, %v3205_v53  ;;  %v1510_v2 = vunpack.c.l.b16 %v1497_v58 }
 0x160   : > { %v1270_v60 = vpop.f32.mrf.mxu2  ;;  %2495 = vmatmul.msk.bf16.gmra.mxu1 %vm635_vm4, %v3611_v30  ;;  %v3632_v15 = vadd.f32 %v1558_v48, %v1464_v18  ;;  %v953_v48 = vadd.f32 %v952_v51, %v3394_v26 }
 0x161   : > { %v1331_v9 = vadd.f32 %v1270_v60, %v950_v24  ;;  %v3650_v22 = vpack.c.b16 %v1511_v39, %v1510_v2 }
 0x164   : > { %v1560_v43 = vpop.f32.mrf.mxu0 }
 0x165   : > { %v1404_v31 = vpop.f32.mrf.mxu3  ;;  %2528 = vmatmul.msk.bf16.gmra.mxu2 %vm635_vm4, %v3634_v46  ;;  %v954_v49 = vpop.f32.mrf.mxu1 }
 0x166   : > { %v1465_v7 = vadd.f32 %v1404_v31, %v1331_v9  ;;  %v955_v26 = vadd.f32 %v954_v49, %v3411_v0 }
 0x168   : > { %v1273_v29 = vpop.f32.mrf.mxu2  ;;  %v3646_v28 = vadd.f32 %v1560_v43, %v1465_v7 }
 0x169   : > { %v1332_v5 = vadd.f32 %v1273_v29, %v953_v48 }
 0x16a   : > { %2549 = vmatmul.msk.bf16.gmra.mxu3 %vm635_vm4, %v3643_v54 }
 0x16c   : > { %v1563_v34 = vpop.f32.mrf.mxu0 }
 0x16d   : > { %v1407_v18 = vpop.f32.mrf.mxu3  ;;  %v957_v24 = vpop.f32.mrf.mxu1 }
 0x16e   : > { %v1466_v60 = vadd.f32 %v1407_v18, %v1332_v5  ;;  %v958_v63 = vadd.f32 %v957_v24, %v3296_v16 }
 0x16f   : > { %2566 = vmatmul.msk.bf16.gmra.mxu0 %vm635_vm4, %v3650_v22 }
 0x170   : > { %v1275_v51 = vpop.f32.mrf.mxu2  ;;  %2569 = vmatmul.msk.bf16.vlgmr.msra.gmra.mxu1 %vm635_vm4, %v3230_v55  ;;  %v3657_v17 = vadd.f32 %v1563_v34, %v1466_v60 }
 0x171   : > { %v1333_v38 = vadd.f32 %v1275_v51, %v955_v26 }
 0x174   : > { %v1565_v61 = vpop.f32.mrf.mxu0 }
 0x175   : > { %v1409_v9 = vpop.f32.mrf.mxu3  ;;  %2590 = vmatmul.msk.bf16.vlgmr.msra.gmra.mxu2 %vm635_vm4, %v3242_v6  ;;  %v959_v43 = vpop.f32.mrf.mxu1 }
 0x176   : > { %v1467_v58 = vadd.f32 %v1409_v9, %v1333_v38  ;;  %v960_v6 = vadd.f32 %v959_v43, %v3318_v57 }
 0x178   : > { %v1278_v31 = vpop.f32.mrf.mxu2  ;;  %v3662_v7 = vadd.f32 %v1565_v61, %v1467_v58 }
 0x179   : > { %v1334_v0 = vadd.f32 %v1278_v31, %v958_v63 }
 0x17a   : > { %2607 = vmatmul.msk.bf16.vlgmr.msra.gmra.mxu3 %vm635_vm4, %v3133_v45 }
 0x17c   : > { %v1568_v55 = vpop.f32.mrf.mxu0 }
 0x17d   : > { %v1412_v49 = vpop.f32.mrf.mxu3  ;;  %v962_v48 = vpop.f32.mrf.mxu1 }
 0x17e   : > { %v1468_v2 = vadd.f32 %v1412_v49, %v1334_v0  ;;  %v963_v24 = vadd.f32 %v962_v48, %v3338_v59 }
 0x17f   : > { %2625 = vmatmul.msk.bf16.vlgmr.msra.gmra.mxu0 %vm635_vm4, %v3256_v52 }
 0x180   : > { %v1280_v39 = vpop.f32.mrf.mxu2  ;;  %2570 = vmatmul.msk.bf16.gmra.mxu1 %vm635_vm4, %v3256_v52  ;;  %v3671_v16 = vadd.f32 %v1568_v55, %v1468_v2 }
 0x181   : > { %v1335_v29 = vadd.f32 %v1280_v39, %v960_v6 }
 0x184   : > { %v1570_v5 = vpop.f32.mrf.mxu0 }
 0x185   : > { %v1414_v34 = vpop.f32.mrf.mxu3  ;;  %2591 = vmatmul.msk.bf16.gmra.mxu2 %vm635_vm4, %v3262_v41  ;;  %v964_v45 = vpop.f32.mrf.mxu1 }
 0x186   : > { %v1469_v18 = vadd.f32 %v1414_v34, %v1335_v29  ;;  %v965_v41 = vadd.f32 %v964_v45, %v3356_v3 }
 0x188   : > { %v1283_v60 = vpop.f32.mrf.mxu2  ;;  %v3676_v26 = vadd.f32 %v1570_v5, %v1469_v18 }
 0x189   : > { %v1336_v57 = vadd.f32 %v1283_v60, %v963_v24 }
 0x18a   : > { %2608 = vmatmul.msk.bf16.gmra.mxu3 %vm635_vm4, %v3223_v20 }
 0x18c   : > { %v1573_v52 = vpop.f32.mrf.mxu0 }
 0x18d   : > { %v1417_v51 = vpop.f32.mrf.mxu3  ;;  %v967_v38 = vpop.f32.mrf.mxu1 }
 0x18e   : > { %v1470_v61 = vadd.f32 %v1417_v51, %v1336_v57  ;;  %v968_v0 = vadd.f32 %v967_v38, %v3375_v23 }
 0x18f   : > { %2626 = vmatmul.msk.bf16.gmra.mxu0 %vm635_vm4, %v3276_v40 }
 0x190   : > { %v1285_v9 = vpop.f32.mrf.mxu2  ;;  %2571 = vmatmul.msk.bf16.gmra.mxu1 %vm635_vm4, %v3276_v40  ;;  %v3685_v59 = vadd.f32 %v1573_v52, %v1470_v61 }
 0x191   : > { %v1337_v43 = vadd.f32 %v1285_v9, %v965_v41 }
 0x194   : > { %v1575_v58 = vpop.f32.mrf.mxu0 }
 0x195   : > { %v1419_v63 = vpop.f32.mrf.mxu3  ;;  %2592 = vmatmul.msk.bf16.gmra.mxu2 %vm635_vm4, %v3284_v8  ;;  %v969_v20 = vpop.f32.mrf.mxu1 }
 0x196   : > { %v1471_v31 = vadd.f32 %v1419_v63, %v1337_v43  ;;  %v970_v8 = vadd.f32 %v969_v20, %v3396_v1  ;;  %v4028_v43 = vld [vmem:[#allocation21_spill] sm:$0xff]  ;;  %v4029_v63 = vld [vmem:[#allocation19_spill] sm:$0xff] }
 0x198   : > { %v1288_v55 = vpop.f32.mrf.mxu2  ;;  %v3690_v49 = vadd.f32 %v1575_v58, %v1471_v31 }
 0x199   : > { %v1338_v3 = vadd.f32 %v1288_v55, %v968_v0  ;;  %v4030_v55 = vld [vmem:[#allocation11_spill] sm:$0xff] }
 0x19a   : > { %2609 = vmatmul.msk.bf16.gmra.mxu3 %vm635_vm4, %v2905_v62 }
 0x19c   : > { %v1578_v40 = vpop.f32.mrf.mxu0 }
 0x19d   : > { %v1422_v48 = vpop.f32.mrf.mxu3  ;;  %v972_v2 = vpop.f32.mrf.mxu1 }
 0x19e   : > { %v1472_v6 = vadd.f32 %v1422_v48, %v1338_v3  ;;  %v973_v18 = vadd.f32 %v972_v2, %v3418_v56  ;;  %v4031_v2 = vld [vmem:[#allocation24_spill] sm:$0xff] }
 0x19f   : > { %2627 = vmatmul.msk.bf16.gmra.mxu0 %vm635_vm4, %v3304_v12 }
 0x1a0   : > { %v1290_v39 = vpop.f32.mrf.mxu2  ;;  %2572 = vmatmul.msk.bf16.gmra.mxu1 %vm635_vm4, %v3304_v12  ;;  %v3699_v23 = vadd.f32 %v1578_v40, %v1472_v6  ;;  %v4032_v6 = vld [vmem:[#allocation20_spill] sm:$0xff] }
 0x1a1   : > { %v1339_v29 = vadd.f32 %v1290_v39, %v970_v8 }
 0x1a4   : > { %v1580_v5 = vpop.f32.mrf.mxu0 }
 0x1a5   : > { %v1424_v34 = vpop.f32.mrf.mxu3  ;;  %2593 = vmatmul.msk.bf16.gmra.mxu2 %vm635_vm4, %v3312_v27  ;;  %v974_v62 = vpop.f32.mrf.mxu1 }
 0x1a6   : > { %v1473_v45 = vadd.f32 %v1424_v34, %v1339_v29  ;;  %v975_v27 = vadd.f32 %v974_v62, %v3433_v44 }
 0x1a8   : > { %v1293_v24 = vpop.f32.mrf.mxu2  ;;  %v3704_v60 = vadd.f32 %v1580_v5, %v1473_v45  ;;  %v4033_v45 = vld [vmem:[#allocation25_spill] sm:$0xff] }
 0x1a9   : > { %v1340_v1 = vadd.f32 %v1293_v24, %v973_v18 }
 0x1aa   : > { %2610 = vmatmul.msk.bf16.gmra.mxu3 %vm635_vm4, %v2979_v37 }
 0x1ac   : > { %v1583_v12 = vpop.f32.mrf.mxu0 }
 0x1ad   : > { %v1427_v57 = vpop.f32.mrf.mxu3  ;;  %v977_v52 = vpop.f32.mrf.mxu1 }
 0x1ae   : > { %v1474_v51 = vadd.f32 %v1427_v57, %v1340_v1  ;;  %v978_v20 = vadd.f32 %v977_v52, %v4029_v63  ;;  %v4034_v1 = vld [vmem:[#allocation22_spill] sm:$0xff] }
 0x1af   : > { %2628 = vmatmul.msk.bf16.gmra.mxu0 %vm635_vm4, %v3336_v33 }
 0x1b0   : > { %v1295_v38 = vpop.f32.mrf.mxu2  ;;  %2573 = vmatmul.msk.bf16.gmra.mxu1 %vm635_vm4, %v3336_v33  ;;  %v3713_v56 = vadd.f32 %v1583_v12, %v1474_v51 }
 0x1b1   : > { %v1341_v61 = vadd.f32 %v1295_v38, %v975_v27  ;;  %v4035_v27 = vld [vmem:[#allocation17_spill] sm:$0xff] }
 0x1b4   : > { %v1585_v41 = vpop.f32.mrf.mxu0 }
 0x1b5   : > { %v1429_v9 = vpop.f32.mrf.mxu3  ;;  %2594 = vmatmul.msk.bf16.gmra.mxu2 %vm635_vm4, %v4028_v43  ;;  %v979_v37 = vpop.f32.mrf.mxu1  ;;  %v4036_v43 = vld [vmem:[#allocation27_spill] sm:$0xff] }
 0x1b6   : > { %v1475_v58 = vadd.f32 %v1429_v9, %v1341_v61  ;;  %v980_v8 = vadd.f32 %v979_v37, %v4032_v6  ;;  %v4037_v37 = vld [vmem:[#allocation23_spill] sm:$0xff] }
 0x1b8   : > { %v1298_v31 = vpop.f32.mrf.mxu2  ;;  %v3718_v0 = vadd.f32 %v1585_v41, %v1475_v58 }
 0x1b9   : > { %v1342_v44 = vadd.f32 %v1298_v31, %v978_v20 }
 0x1ba   : > { %2611 = vmatmul.msk.bf16.gmra.mxu3 %vm635_vm4, %v4030_v55 }
 0x1bc   : > { %v1588_v33 = vpop.f32.mrf.mxu0 }
 0x1bd   : > { %v1432_v3 = vpop.f32.mrf.mxu3  ;;  %v982_v40 = vpop.f32.mrf.mxu1 }
 0x1be   : > { %v1476_v48 = vadd.f32 %v1432_v3, %v1342_v44  ;;  %v983_v12 = vadd.f32 %v982_v40, %v4034_v1  ;;  %v4042_v1 = vld [vmem:[#allocation28_spill] sm:$0xff] }
 0x1bf   : > { %2629 = vmatmul.msk.bf16.gmra.mxu0 %vm635_vm4, %v4031_v2 }
 0x1c0   : > { %v1300_v39 = vpop.f32.mrf.mxu2  ;;  %2574 = vmatmul.msk.bf16.gmra.mxu1 %vm635_vm4, %v4031_v2  ;;  %v3727_v29 = vadd.f32 %v1588_v33, %v1476_v48  ;;  %v4038_v33 = vld [vmem:[#allocation29_spill] sm:$0xff]  ;;  %v4039_v48 = vld [vmem:[#allocation26_spill] sm:$0xff] }
 0x1c1   : > { %v1343_v5 = vadd.f32 %v1300_v39, %v980_v8 }
 0x1c4   : > { %v1590_v34 = vpop.f32.mrf.mxu0 }
 0x1c5   : > { %v1434_v62 = vpop.f32.mrf.mxu3  ;;  %2595 = vmatmul.msk.bf16.gmra.mxu2 %vm635_vm4, %v4033_v45  ;;  %v984_v18 = vpop.f32.mrf.mxu1 }
 0x1c6   : > { %v1477_v24 = vadd.f32 %v1434_v62, %v1343_v5  ;;  %v985_v58 = vadd.f32 %v984_v18, %v4037_v37  ;;  %v4040_v5 = vld [vmem:[#allocation5_spill] sm:$0xff] }
 0x1c8   : > { %v1303_v57 = vpop.f32.mrf.mxu2  ;;  %v3732_v52 = vadd.f32 %v1590_v34, %v1477_v24  ;;  %v4041_v24 = vld [vmem:[#allocation31_spill] sm:$0xff] }
 0x1c9   : > { %v1344_v51 = vadd.f32 %v1303_v57, %v983_v12 }
 0x1ca   : > { %2612 = vmatmul.msk.bf16.gmra.mxu3 %vm635_vm4, %v4035_v27 }
 0x1cc   : > { %v1593_v38 = vpop.f32.mrf.mxu0 }
 0x1cd   : > { %v1437_v61 = vpop.f32.mrf.mxu3  ;;  %v987_v41 = vpop.f32.mrf.mxu1 }
 0x1ce   : > { %v1478_v9 = vadd.f32 %v1437_v61, %v1344_v51  ;;  %v988_v2 = vadd.f32 %v987_v41, %v4039_v48 }
 0x1cf   : > { %2630 = vmatmul.msk.bf16.gmra.mxu0 %vm635_vm4, %v4036_v43 }
 0x1d0   : > { %v1305_v63 = vpop.f32.mrf.mxu2  ;;  %2575 = vmatmul.msk.bf16.gmra.mxu1 %vm635_vm4, %v4036_v43  ;;  %v3741_v20 = vadd.f32 %v1593_v38, %v1478_v9  ;;  %v4043_v43 = vld [vmem:[#allocation30_spill] sm:$0xff] }
 0x1d1   : > { %v1345_v31 = vadd.f32 %v1305_v63, %v985_v58 }
 0x1d4   : > { %v1595_v44 = vpop.f32.mrf.mxu0 }
 0x1d5   : > { %v1439_v55 = vpop.f32.mrf.mxu3  ;;  %2596 = vmatmul.msk.bf16.gmra.mxu2 %vm635_vm4, %v4038_v33  ;;  %v989_v3 = vpop.f32.mrf.mxu1 }
 0x1d6   : > { %v1479_v40 = vadd.f32 %v1439_v55, %v1345_v31  ;;  %v990_v12 = vadd.f32 %v989_v3, %v4042_v1 }
 0x1d8   : > { %v1308_v6 = vpop.f32.mrf.mxu2  ;;  %v3746_v8 = vadd.f32 %v1595_v44, %v1479_v40 }
 0x1d9   : > { %v1346_v39 = vadd.f32 %v1308_v6, %v988_v2 }
 0x1da   : > { %2613 = vmatmul.msk.bf16.gmra.mxu3 %vm635_vm4, %v4040_v5 }
 0x1dc   : > { %v1598_v34 = vpop.f32.mrf.mxu0 }
 0x1dd   : > { %v1442_v62 = vpop.f32.mrf.mxu3  ;;  %v992_v45 = vpop.f32.mrf.mxu1 }
 0x1de   : > { %v1480_v18 = vadd.f32 %v1442_v62, %v1346_v39  ;;  %v993_v37 = vadd.f32 %v992_v45, %v4043_v43  ;;  %v4045_v43 = vld [vmem:[#allocation12_spill] sm:$0xff] }
 0x1df   : > { %2631 = vmatmul.msk.bf16.gmra.mxu0 %vm635_vm4, %v4041_v24 }
 0x1e0   : > { %v1310_v57 = vpop.f32.mrf.mxu2  ;;  %2576 = vmatmul.msk.bf16.gmra.mxu1 %vm635_vm4, %v4041_v24  ;;  %v3755_v51 = vadd.f32 %v1598_v34, %v1480_v18 }
 0x1e1   : > { %v1347_v27 = vadd.f32 %v1310_v57, %v990_v12 }
 0x1e4   : > { %v1600_v38 = vpop.f32.mrf.mxu0 }
 0x1e5   : > { %v1444_v61 = vpop.f32.mrf.mxu3  ;;  %2597 = vmatmul.msk.bf16.gmra.mxu2 %vm635_vm4, %v3448_v19  ;;  %v994_v41 = vpop.f32.mrf.mxu1  ;;  %v4044_v19 = vld [vmem:[#allocation32_spill] sm:$0xff] }
 0x1e6   : > { %v1481_v9 = vadd.f32 %v1444_v61, %v1347_v27  ;;  %v995_v48 = vadd.f32 %v994_v41, %v4044_v19 }
 0x1e8   : > { %v1313_v58 = vpop.f32.mrf.mxu2  ;;  %v3760_v63 = vadd.f32 %v1600_v38, %v1481_v9 }
 0x1e9   : > { %v1348_v31 = vadd.f32 %v1313_v58, %v993_v37 }
 0x1ea   : > { %2614 = vmatmul.msk.bf16.gmra.mxu3 %vm635_vm4, %v3004_v4 }
 0x1ec   : > { %v1603_v44 = vpop.f32.mrf.mxu0 }
 0x1ed   : > { %v1447_v55 = vpop.f32.mrf.mxu3  ;;  %v1668_v33 = vpop.f32.mrf.mxu1 }
 0x1ee   : > { %v1482_v3 = vadd.f32 %v1447_v55, %v1348_v31  ;;  %v1748_v40 = vadd.f32 %v1668_v33, %v3463_v32 }
 0x1ef   : > { %2632 = vmatmul.msk.bf16.gmra.mxu0 %vm635_vm4, %v3465_v10 }
 0x1f0   : > { %v1315_v2 = vpop.f32.mrf.mxu2  ;;  %2577 = vmatmul.msk.bf16.gmra.mxu1 %vm635_vm4, %v3465_v10  ;;  %v3770_v6 = vadd.f32 %v1603_v44, %v1482_v3  ;;  %v4046_v3 = vld [vmem:[#allocation18_spill] sm:$0xff] }
 0x1f1   : > { %v1349_v39 = vadd.f32 %v1315_v2, %v995_v48 }
 0x1f4   : > { %v1605_v5 = vpop.f32.mrf.mxu0 }
 0x1f5   : > { %v1449_v4 = vpop.f32.mrf.mxu3  ;;  %2598 = vmatmul.msk.bf16.gmra.mxu2 %vm635_vm4, %v3472_v42  ;;  %v1670_v34 = vpop.f32.mrf.mxu1 }
 0x1f6   : > { %v1483_v62 = vadd.f32 %v1449_v4, %v1349_v39  ;;  %v1749_v32 = vadd.f32 %v1670_v34, %v3476_v35  ;;  %v4047_v39 = vld [vmem:[#allocation33_spill] sm:$0xff] }
 0x1f8   : > { %v1802_v45 = vpop.f32.mrf.mxu2  ;;  %v3775_v18 = vadd.f32 %v1605_v5, %v1483_v62  ;;  %v4048_v5 = vld [vmem:[#allocation34_spill] sm:$0xff] }
 0x1f9   : > { %v1882_v24 = vadd.f32 %v1802_v45, %v1748_v40 }
 0x1fa   : > { %2615 = vmatmul.msk.bf16.gmra.mxu3 %vm635_vm4, %v3089_v25 }
 0x1fc   : > { %v2098_v10 = vpop.f32.mrf.mxu0 }
 0x1fd   : > { %v1958_v1 = vpop.f32.mrf.mxu3  ;;  %v1673_v12 = vpop.f32.mrf.mxu1 }
 0x1fe   : > { %v2038_v57 = vadd.f32 %v1958_v1, %v1882_v24  ;;  %v1750_v27 = vadd.f32 %v1673_v12, %v3489_v21  ;;  %v4049_v12 = vld [vmem:[#allocation35_spill] sm:$0xff] }
 0x1ff   : > { %2633 = vmatmul.msk.bf16.gmra.mxu0 %vm635_vm4, %v3491_v13 }
 0x200   : > { %v2178_v42 = vadd.f32 %v2098_v10, %v2038_v57  ;;  %v1804_v38 = vpop.f32.mrf.mxu2  ;;  %2578 = vmatmul.msk.bf16.gmra.mxu1 %vm635_vm4, %v3491_v13 }
 0x201   : > { %v1883_v35 = vadd.f32 %v1804_v38, %v1749_v32 }
 0x202   : > { %v2248_v44 = vmul.f32 %v2178_v42, %v2178_v42 }
 0x204   : > { %v2100_v61 = vpop.f32.mrf.mxu0 }
 0x205   : > { %v1960_v41 = vpop.f32.mrf.mxu3  ;;  %2599 = vmatmul.msk.bf16.gmra.mxu2 %vm635_vm4, %v3498_v50  ;;  %v1675_v25 = vpop.f32.mrf.mxu1 }
 0x206   : > { %v2039_v9 = vadd.f32 %v1960_v41, %v1883_v35  ;;  %v1751_v37 = vadd.f32 %v1675_v25, %v4045_v43  ;;  %v4051_v43 = vld [vmem:[#allocation6_spill] sm:$0xff] }
 0x208   : > { %v2179_v58 = vadd.f32 %v2100_v61, %v2039_v9  ;;  %v1807_v21 = vpop.f32.mrf.mxu2 }
 0x209   : > { %v1884_v31 = vadd.f32 %v1807_v21, %v1750_v27 }
 0x20a   : > { %v2210_v55 = vadd.f32 %v2179_v58, %v2178_v42  ;;  %v2249_v33 = vmul.f32 %v2179_v58, %v2179_v58  ;;  %2616 = vmatmul.msk.bf16.gmra.mxu3 %vm635_vm4, %v4046_v3  ;;  %v4050_v42 = vld [vmem:[#allocation36_spill] sm:$0xff]  ;;  %v4053_v3 = vld [vmem:[#allocation38_spill] sm:$0xff] }
 0x20c   : > { %v2280_v13 = vadd.f32 %v2249_v33, %v2248_v44  ;;  %v2103_v40 = vpop.f32.mrf.mxu0 }
 0x20d   : > { %v1963_v19 = vpop.f32.mrf.mxu3  ;;  %v1678_v48 = vpop.f32.mrf.mxu1 }
 0x20e   : > { %v2040_v2 = vadd.f32 %v1963_v19, %v1884_v31  ;;  %v1752_v50 = vadd.f32 %v1678_v48, %v4047_v39 }
 0x20f   : > { %2634 = vmatmul.msk.bf16.gmra.mxu0 %vm635_vm4, %v4048_v5 }
 0x210   : > { %v2180_v4 = vadd.f32 %v2103_v40, %v2040_v2  ;;  %v1809_v34 = vpop.f32.mrf.mxu2  ;;  %2579 = vmatmul.msk.bf16.gmra.mxu1 %vm635_vm4, %v4048_v5 }
 0x211   : > { %v1885_v62 = vadd.f32 %v1809_v34, %v1751_v37 }
 0x212   : > { %v2211_v32 = vadd.f32 %v2210_v55, %v2180_v4  ;;  %v2250_v45 = vmul.f32 %v2180_v4, %v2180_v4  ;;  %v4052_v55 = vld [vmem:[#allocation37_spill] sm:$0xff]  ;;  %v4054_v4 = vld [vmem:[#allocation39_spill] sm:$0xff] }
 0x214   : > { %v2281_v24 = vadd.f32 %v2280_v13, %v2250_v45  ;;  %v2105_v10 = vpop.f32.mrf.mxu0 }
 0x215   : > { %v1965_v1 = vpop.f32.mrf.mxu3  ;;  %2600 = vmatmul.msk.bf16.gmra.mxu2 %vm635_vm4, %v4049_v12  ;;  %v1680_v57 = vpop.f32.mrf.mxu1 }
 0x216   : > { %v2041_v27 = vadd.f32 %v1965_v1, %v1885_v62  ;;  %v1753_v38 = vadd.f32 %v1680_v57, %v4050_v42 }
 0x218   : > { %v2181_v35 = vadd.f32 %v2105_v10, %v2041_v27  ;;  %v1812_v61 = vpop.f32.mrf.mxu2  ;;  %v4056_v27 = vld [vmem:[#allocation7_spill] sm:$0xff] }
 0x219   : > { %v1886_v41 = vadd.f32 %v1812_v61, %v1752_v50 }
 0x21a   : > { %v2212_v25 = vadd.f32 %v2211_v32, %v2181_v35  ;;  %v2251_v9 = vmul.f32 %v2181_v35, %v2181_v35  ;;  %2617 = vmatmul.msk.bf16.gmra.mxu3 %vm635_vm4, %v4051_v43  ;;  %v4055_v32 = vld [vmem:[#allocation40_spill] sm:$0xff]  ;;  %v4058_v43 = vld [vmem:[#allocation42_spill] sm:$0xff] }
 0x21c   : > { %v2282_v37 = vadd.f32 %v2281_v24, %v2251_v9  ;;  %v2108_v58 = vpop.f32.mrf.mxu0 }
 0x21d   : > { %v1968_v21 = vpop.f32.mrf.mxu3  ;;  %v1683_v31 = vpop.f32.mrf.mxu1 }
 0x21e   : > { %v2042_v44 = vadd.f32 %v1968_v21, %v1886_v41  ;;  %v1754_v33 = vadd.f32 %v1683_v31, %v4052_v55 }
 0x21f   : > { %2635 = vmatmul.msk.bf16.gmra.mxu0 %vm635_vm4, %v4053_v3 }
 0x220   : > { %v2182_v13 = vadd.f32 %v2108_v58, %v2042_v44  ;;  %v1814_v40 = vpop.f32.mrf.mxu2  ;;  %2580 = vmatmul.msk.bf16.gmra.mxu1 %vm635_vm4, %v4053_v3 }
 0x221   : > { %v1887_v19 = vadd.f32 %v1814_v40, %v1753_v38 }
 0x222   : > { %v2213_v48 = vadd.f32 %v2212_v25, %v2182_v13  ;;  %v2252_v2 = vmul.f32 %v2182_v13, %v2182_v13  ;;  %v4057_v25 = vld [vmem:[#allocation41_spill] sm:$0xff] }
 0x223   : > { %v4059_v13 = vld [vmem:[#allocation9_spill] sm:$0xff] }
 0x224   : > { %v2283_v39 = vadd.f32 %v2282_v37, %v2252_v2  ;;  %v2110_v50 = vpop.f32.mrf.mxu0 }
 0x225   : > { %v1970_v5 = vpop.f32.mrf.mxu3  ;;  %2601 = vmatmul.msk.bf16.gmra.mxu2 %vm635_vm4, %v4054_v4  ;;  %v1685_v34 = vpop.f32.mrf.mxu1 }
 0x226   : > { %v2043_v62 = vadd.f32 %v1970_v5, %v1887_v19  ;;  %v1755_v45 = vadd.f32 %v1685_v34, %v4055_v32 }
 0x228   : > { %v2183_v24 = vadd.f32 %v2110_v50, %v2043_v62  ;;  %v1817_v10 = vpop.f32.mrf.mxu2  ;;  %v4061_v62 = vld [vmem:[#allocation13_spill] sm:$0xff] }
 0x229   : > { %v1888_v1 = vadd.f32 %v1817_v10, %v1754_v33 }
 0x22a   : > { %v2214_v12 = vadd.f32 %v2213_v48, %v2183_v24  ;;  %v2253_v57 = vmul.f32 %v2183_v24, %v2183_v24  ;;  %2618 = vmatmul.msk.bf16.gmra.mxu3 %vm635_vm4, %v4056_v27  ;;  %v4060_v48 = vld [vmem:[#allocation10_spill] sm:$0xff]  ;;  %v4063_v27 = vld [vmem:[#allocation44_spill] sm:$0xff] }
 0x22c   : > { %v2284_v42 = vadd.f32 %v2283_v39, %v2253_v57  ;;  %v2113_v38 = vpop.f32.mrf.mxu0 }
 0x22d   : > { %v1973_v35 = vpop.f32.mrf.mxu3  ;;  %v1688_v61 = vpop.f32.mrf.mxu1 }
 0x22e   : > { %v2044_v41 = vadd.f32 %v1973_v35, %v1888_v1  ;;  %v1756_v9 = vadd.f32 %v1688_v61, %v4057_v25 }
 0x22f   : > { %2636 = vmatmul.msk.bf16.gmra.mxu0 %vm635_vm4, %v4058_v43 }
 0x230   : > { %v2184_v37 = vadd.f32 %v2113_v38, %v2044_v41  ;;  %v1819_v58 = vpop.f32.mrf.mxu2  ;;  %2581 = vmatmul.msk.bf16.gmra.mxu1 %vm635_vm4, %v4058_v43 }
 0x231   : > { %v1889_v21 = vadd.f32 %v1819_v58, %v1755_v45 }
 0x232   : > { %v2215_v31 = vadd.f32 %v2214_v12, %v2184_v37  ;;  %v2254_v44 = vmul.f32 %v2184_v37, %v2184_v37  ;;  %v4062_v12 = vld [vmem:[#allocation43_spill] sm:$0xff] }
 0x234   : > { %v2285_v55 = vadd.f32 %v2284_v42, %v2254_v44  ;;  %v2115_v33 = vpop.f32.mrf.mxu0 }
 0x235   : > { %v1975_v3 = vpop.f32.mrf.mxu3  ;;  %2602 = vmatmul.msk.bf16.gmra.mxu2 %vm635_vm4, %v4059_v13  ;;  %v1690_v40 = vpop.f32.mrf.mxu1 }
 0x236   : > { %v2045_v19 = vadd.f32 %v1975_v3, %v1889_v21  ;;  %v1757_v2 = vadd.f32 %v1690_v40, %v4060_v48 }
 0x238   : > { %v2185_v39 = vadd.f32 %v2115_v33, %v2045_v19  ;;  %v1822_v50 = vpop.f32.mrf.mxu2  ;;  %v4064_v19 = vld [vmem:[#allocation45_spill] sm:$0xff] }
 0x239   : > { %v1890_v5 = vadd.f32 %v1822_v50, %v1756_v9  ;;  %v1643_v48 = vrot.slane %v4064_v19, 5 }
 0x23a   : > { %v2216_v4 = vadd.f32 %v2215_v31, %v2185_v39  ;;  %v2255_v34 = vmul.f32 %v2185_v39, %v2185_v39  ;;  %2619 = vmatmul.msk.bf16.gmra.mxu3 %vm635_vm4, %v4061_v62  ;;  %v3834_v39 = vld [vmem:[%s2866_s7 + $0xd0] sm:$0xf] }
 0x23c   : > { %v2286_v32 = vadd.f32 %v2285_v55, %v2255_v34  ;;  %v2118_v45 = vpop.f32.mrf.mxu0 }
 0x23d   : > { %v1978_v24 = vpop.f32.mrf.mxu3  ;;  %v1693_v10 = vpop.f32.mrf.mxu1 }
 0x23e   : > { %v2046_v1 = vadd.f32 %v1978_v24, %v1890_v5  ;;  %v1758_v57 = vadd.f32 %v1693_v10, %v4062_v12 }
 0x23f   : > { %2637 = vmatmul.msk.bf16.gmra.mxu0 %vm635_vm4, %v4063_v27 }
 0x240   : > { %v2186_v42 = vadd.f32 %v2118_v45, %v2046_v1  ;;  %v1824_v38 = vpop.f32.mrf.mxu2  ;;  %2582 = vmatmul.msk.bf16.gmra.mxu1 %vm635_vm4, %v4063_v27  ;;  %v1928_v45 = vshrl.u32 %v3834_v39, 16  ;;  %v1646_v1 = vrot.slane %v3618_v11, 5 }
 0x241   : > { %v1891_v35 = vadd.f32 %v1824_v38, %v1757_v2  ;;  %v3831_v2 = vld [vmem:[%s2866_s7 + $0xcc] sm:$0xf] }
 0x242   : > { %v2217_v61 = vadd.f32 %v2216_v4, %v2186_v42  ;;  %v2256_v41 = vmul.f32 %v2186_v42, %v2186_v42  ;;  %v4065_v4 = vld [vmem:[#allocation8_spill] sm:$0xff]  ;;  %v1918_v62 = vshll.u32 %v3831_v2, 16 }
 0x243   : > { %v2567_v34 = vrot.slane %v4065_v4, 9 }
 0x244   : > { %v2287_v25 = vadd.f32 %v2286_v32, %v2256_v41  ;;  %v2120_v9 = vpop.f32.mrf.mxu0  ;;  %v1924_v32 = vshll.u32 %v3834_v39, 16  ;;  %v1930_v41 = vrot.slane %v1928_v45, 4 }
 0x245   : > { %v1980_v43 = vpop.f32.mrf.mxu3  ;;  %2603 = vmatmul.msk.bf16.gmra.mxu2 %vm635_vm4, %v3611_v30  ;;  %v1695_v37 = vpop.f32.mrf.mxu1  ;;  %v1644_v42 = vsel %vm3196_vm7, %v2567_v34, %v1643_v48 }
 0x246   : > { %v2047_v58 = vadd.f32 %v1980_v43, %v1891_v35  ;;  %v1759_v21 = vadd.f32 %v1695_v37, %v3615_v47  ;;  %v1920_v35 = vrot.slane %v1918_v62, 5  ;;  %v196_v37 = vld [vmem:[%s2866_s7 + $0xd4] sm:$0x1] }
 0x248   : > { %v2187_v31 = vadd.f32 %v2120_v9, %v2047_v58  ;;  %v1827_v44 = vpop.f32.mrf.mxu2 }
 0x249   : > { %v1892_v55 = vadd.f32 %v1827_v44, %v1758_v57 }
 0x24a   : > { %v2218_v33 = vadd.f32 %v2217_v61, %v2187_v31  ;;  %v2257_v3 = vmul.f32 %v2187_v31, %v2187_v31  ;;  %2620 = vmatmul.msk.bf16.gmra.mxu3 %vm635_vm4, %v3205_v53  ;;  %v1915_v53 = vshrl.u32 %v3831_v2, 16  ;;  %v1926_v61 = vrot.slane %v1924_v32, 5 }
 0x24c   : > { %v2288_v13 = vadd.f32 %v2287_v25, %v2257_v3  ;;  %v2123_v40 = vpop.f32.mrf.mxu0  ;;  %v1917_v38 = vrot.slane %v1915_v53, 4  ;;  %v1934_v3 = vshll.u32 %v196_v37, 16 }
 0x24d   : > { %v1983_v30 = vpop.f32.mrf.mxu3  ;;  %v1698_v50 = vpop.f32.mrf.mxu1 }
 0x24e   : > { %v2048_v5 = vadd.f32 %v1983_v30, %v1892_v55  ;;  %v1760_v47 = vadd.f32 %v1698_v50, %v3632_v15  ;;  %v1645_v15 = vrot.slane %v1643_v48, 4  ;;  %v1921_v55 = vor.u32 %v1920_v35, %v1917_v38 }
 0x24f   : > { %2638 = vmatmul.msk.bf16.gmra.mxu0 %vm635_vm4, %v3634_v46  ;;  %v1936_v4 = vrot.slane %v1934_v3, 5 }
 0x250   : > { %v2188_v24 = vadd.f32 %v2123_v40, %v2048_v5  ;;  %v1829_v10 = vpop.f32.mrf.mxu2  ;;  %2583 = vmatmul.msk.bf16.gmra.mxu1 %vm635_vm4, %v3634_v46  ;;  %v1647_v43 = vsel %vm3196_vm7, %v1645_v15, %v1646_v1  ;;  %v1922_v5 = vrot.slane %v1921_v55, 4  ;;  %v2623_v1 = vrot.slane %v3831_v2, 9 }
 0x251   : > { %v1893_v12 = vadd.f32 %v1829_v10, %v1759_v21  ;;  %v1650_v21 = vunpack.c.l.b16 %v1644_v42  ;;  %v1651_v44 = vunpack.c.l.b16 %v1647_v43 }
 0x252   : > { %v2219_v57 = vadd.f32 %v2218_v33, %v2188_v24  ;;  %v2258_v27 = vmul.f32 %v2188_v24, %v2188_v24  ;;  %v1931_v33 = vor.u32 %v1930_v41, %v1926_v61 }
 0x253   : > { %v1652_v50 = vpack.c.b16 %v1651_v44, %v1650_v21 }
 0x254   : > { %v2289_v25 = vadd.f32 %v2288_v13, %v2258_v27  ;;  %v2125_v9 = vpop.f32.mrf.mxu0  ;;  %v2662_v27 = vld [vmem:[%s2866_s7 + $0xcc] sm:$0xff]  ;;  %s2730_s7 = scalar_lea.hbm %s2729_s6, 2 }
 0x255   : > { %v1985_v46 = vpop.f32.mrf.mxu3  ;;  %2604 = vmatmul.msk.bf16.gmra.mxu2 %vm635_vm4, %v3643_v54  ;;  %v1700_v11 = vpop.f32.mrf.mxu1  ;;  %v1932_v54 = vrot.slane %v1931_v33, 4  ;;  %p2731_p11 = scmp.ne.s32.totalorder %s2729_s6, %s2730_s7  ;;  %p2736_p1 = scmp.lt.s32.totalorder %s2734_s16, %s2730_s7 }
 0x256   : > { %v2049_v58 = vadd.f32 %v1985_v46, %v1893_v12  ;;  %v1761_v31 = vadd.f32 %v1700_v11, %v3646_v28  ;;  %v2073_v28 = vrot.slane %v3834_v39, 5  ;;  %v2076_v12 = vrot.slane %v196_v37, 5 }
 0x257   : > { %p2732_p12 = pnand %p2731_p11, %p2831_p5  ;;  %p2737_p2 = por %p2736_p1, %p2735_p0 }
 0x258   : > { %v2189_v40 = vadd.f32 %v2125_v9, %v2049_v58  ;;  %v1832_v13 = vpop.f32.mrf.mxu2  ;;  %v2075_v39 = vrot.slane %v2073_v28, 4  ;;  %v2074_v36 = vsel %vm3196_vm7, %v2623_v1, %v2073_v28 }
 0x259   : > { %v1894_v19 = vadd.f32 %v1832_v13, %v1760_v47  ;;  %v1927_v47 = vsel %vm2893_vm3, %v1922_v5, %v1926_v61  ;;  %v2080_v11 = vunpack.c.l.b16 %v2074_v36  ;;  %p2733_p13 = pneg %p2732_p12 }
 0x25a   : > { %v2220_v48 = vadd.f32 %v2219_v57, %v2189_v40  ;;  %v2259_v30 = vmul.f32 %v2189_v40, %v2189_v40  ;;  %2621 = vmatmul.msk.bf16.gmra.mxu3 %vm635_vm4, %v3650_v22  ;;  %v1937_v22 = vsel %vm2893_vm3, %v1932_v54, %v1936_v4  ;;  %v1940_v38 = vunpack.c.l.b16 %v1927_v47 }
 0x25b   : > { %v1941_v35 = vunpack.c.l.b16 %v1937_v22  ;;  %v2077_v61 = vsel %vm3196_vm7, %v2075_v39, %v2076_v12  ;;  %p2738_p3 = pnand %p2737_p2, %p2733_p13 }
 0x25c   : > { %v2290_v34 = vadd.f32 %v2289_v25, %v2259_v30  ;;  %v2128_v53 = vpop.f32.mrf.mxu0  ;;  %v2081_v58 = vunpack.c.l.b16 %v2077_v61 }
 0x25d   : > { %v1988_v62 = vpop.f32.mrf.mxu3  ;;  %v1703_v32 = vpop.f32.mrf.mxu1  ;;  %v1942_v37 = vpack.c.b16 %v1941_v35, %v1940_v38 }
 0x25e   : > { %v2050_v45 = vadd.f32 %v1988_v62, %v1894_v19  ;;  %v1762_v24 = vadd.f32 %v1703_v32, %v3657_v17  ;;  %v2082_v3 = vpack.c.b16 %v2081_v58, %v2080_v11 }
 0x25f   : > { %2639 = vmatmul.msk.bf16.gmra.mxu0 %vm635_vm4, %v1652_v50 }
 0x260   : > { %v2190_v10 = vadd.f32 %v2128_v53, %v2050_v45  ;;  %v1834_v15 = vpop.f32.mrf.mxu2  ;;  %2584 = vmatmul.msk.bf16.gmra.mxu1 %vm635_vm4, %v1652_v50 }
 0x261   : > { %v1895_v57 = vadd.f32 %v1834_v15, %v1761_v31 }
 0x262   : > { %v2221_v42 = vadd.f32 %v2220_v48, %v2190_v10  ;;  %v2260_v17 = vmul.f32 %v2190_v10, %v2190_v10 }
 0x264   : > { %v2291_v41 = vadd.f32 %v2290_v34, %v2260_v17  ;;  %v2130_v25 = vpop.f32.mrf.mxu0 }
 0x265   : > { %v1990_v9 = vpop.f32.mrf.mxu3  ;;  %2605 = vmatmul.msk.bf16.gmra.mxu2 %vm635_vm4, %v2662_v27  ;;  %v1705_v2 = vpop.f32.mrf.mxu1 }
 0x266   : > { %v2051_v43 = vadd.f32 %v1990_v9, %v1895_v57  ;;  %v1763_v46 = vadd.f32 %v1705_v2, %v3662_v7 }
 0x268   : > { %v2191_v21 = vadd.f32 %v2130_v25, %v2051_v43  ;;  %v1837_v31 = vpop.f32.mrf.mxu2 }
 0x269   : > { %v1896_v44 = vadd.f32 %v1837_v31, %v1762_v24 }
 0x26a   : > { %v2222_v55 = vadd.f32 %v2221_v42, %v2191_v21  ;;  %v2261_v33 = vmul.f32 %v2191_v21, %v2191_v21  ;;  %2622 = vmatmul.msk.bf16.gmra.mxu3 %vm635_vm4, %v1942_v37 }
 0x26c   : > { %v2292_v14 = vadd.f32 %v2291_v41, %v2261_v33  ;;  %v2133_v40 = vpop.f32.mrf.mxu0 }
 0x26d   : > { %v1993_v13 = vpop.f32.mrf.mxu3  ;;  %v1708_v19 = vpop.f32.mrf.mxu1 }
 0x26e   : > { %v2052_v48 = vadd.f32 %v1993_v13, %v1896_v44  ;;  %v1764_v30 = vadd.f32 %v1708_v19, %v3671_v16 }
 0x26f   : > { %2640 = vmatmul.msk.bf16.gmra.mxu0 %vm635_vm4, %v2082_v3 }
 0x270   : > { %v2192_v7 = vadd.f32 %v2133_v40, %v2052_v48  ;;  %v1839_v50 = vpop.f32.mrf.mxu2 }
 0x271   : > { %v1897_v5 = vadd.f32 %v1839_v50, %v1763_v46 }
 0x272   : > { %v2223_v54 = vadd.f32 %v2222_v55, %v2192_v7  ;;  %v2262_v4 = vmul.f32 %v2192_v7, %v2192_v7 }
 0x274   : > { %v2293_v34 = vadd.f32 %v2292_v14, %v2262_v4  ;;  %v2135_v53 = vpop.f32.mrf.mxu0 }
 0x275   : > { %v1995_v28 = vpop.f32.mrf.mxu3  ;;  %v1710_v62 = vpop.f32.mrf.mxu1 }
 0x276   : > { %v2053_v32 = vadd.f32 %v1995_v28, %v1897_v5  ;;  %v1765_v45 = vadd.f32 %v1710_v62, %v3676_v26 }
 0x278   : > { %v2193_v24 = vadd.f32 %v2135_v53, %v2053_v32  ;;  %v1842_v47 = vpop.f32.mrf.mxu2 }
 0x279   : > { %v1898_v22 = vadd.f32 %v1842_v47, %v1764_v30 }
 0x27a   : > { %v2224_v10 = vadd.f32 %v2223_v54, %v2193_v24  ;;  %v2263_v15 = vmul.f32 %v2193_v24, %v2193_v24 }
 0x27c   : > { %v2294_v16 = vadd.f32 %v2293_v34, %v2263_v15  ;;  %v2138_v1 = vpop.f32.mrf.mxu0 }
 0x27d   : > { %v1998_v39 = vpop.f32.mrf.mxu3  ;;  %v1713_v12 = vpop.f32.mrf.mxu1 }
 0x27e   : > { %v2054_v57 = vadd.f32 %v1998_v39, %v1898_v22  ;;  %v1766_v27 = vadd.f32 %v1713_v12, %v3685_v59 }
 0x280   : > { %v2194_v42 = vadd.f32 %v2138_v1, %v2054_v57  ;;  %v1844_v17 = vpop.f32.mrf.mxu2 }
 0x281   : > { %v1899_v38 = vadd.f32 %v1844_v17, %v1765_v45 }
 0x282   : > { %v2225_v35 = vadd.f32 %v2224_v10, %v2194_v42  ;;  %v2264_v41 = vmul.f32 %v2194_v42, %v2194_v42 }
 0x284   : > { %v2295_v25 = vadd.f32 %v2294_v16, %v2264_v41  ;;  %v2140_v36 = vpop.f32.mrf.mxu0 }
 0x285   : > { %v2000_v26 = vpop.f32.mrf.mxu3  ;;  %v1715_v61 = vpop.f32.mrf.mxu1 }
 0x286   : > { %v2055_v9 = vadd.f32 %v2000_v26, %v1899_v38  ;;  %v1767_v2 = vadd.f32 %v1715_v61, %v3690_v49 }
 0x288   : > { %v2195_v43 = vadd.f32 %v2140_v36, %v2055_v9  ;;  %v1847_v37 = vpop.f32.mrf.mxu2 }
 0x289   : > { %v1900_v46 = vadd.f32 %v1847_v37, %v1766_v27 }
 0x28a   : > { %v2226_v11 = vadd.f32 %v2225_v35, %v2195_v43  ;;  %v2265_v58 = vmul.f32 %v2195_v43, %v2195_v43 }
 0x28c   : > { %v2296_v21 = vadd.f32 %v2295_v25, %v2265_v58  ;;  %v2143_v31 = vpop.f32.mrf.mxu0 }
 0x28d   : > { %v2003_v59 = vpop.f32.mrf.mxu3  ;;  %v1718_v44 = vpop.f32.mrf.mxu1 }
 0x28e   : > { %v2056_v55 = vadd.f32 %v2003_v59, %v1900_v46  ;;  %v1768_v33 = vadd.f32 %v1718_v44, %v3699_v23 }
 0x290   : > { %v2196_v3 = vadd.f32 %v2143_v31, %v2056_v55  ;;  %v1849_v14 = vpop.f32.mrf.mxu2 }
 0x291   : > { %v1901_v40 = vadd.f32 %v1849_v14, %v1767_v2 }
 0x292   : > { %v2227_v13 = vadd.f32 %v2226_v11, %v2196_v3  ;;  %v2266_v19 = vmul.f32 %v2196_v3, %v2196_v3 }
 0x294   : > { %v2297_v48 = vadd.f32 %v2296_v21, %v2266_v19  ;;  %v2145_v30 = vpop.f32.mrf.mxu0 }
 0x295   : > { %v2005_v49 = vpop.f32.mrf.mxu3  ;;  %v1720_v7 = vpop.f32.mrf.mxu1 }
 0x296   : > { %v2057_v50 = vadd.f32 %v2005_v49, %v1901_v40  ;;  %v1769_v47 = vadd.f32 %v1720_v7, %v3704_v60 }
 0x298   : > { %v2197_v5 = vadd.f32 %v2145_v30, %v2057_v50  ;;  %v1852_v54 = vpop.f32.mrf.mxu2 }
 0x299   : > { %v1902_v4 = vadd.f32 %v1852_v54, %v1768_v33 }
 0x29a   : > { %v2228_v34 = vadd.f32 %v2227_v13, %v2197_v5  ;;  %v2267_v53 = vmul.f32 %v2197_v5, %v2197_v5 }
 0x29c   : > { %v2298_v28 = vadd.f32 %v2297_v48, %v2267_v53  ;;  %v2148_v62 = vpop.f32.mrf.mxu0 }
 0x29d   : > { %v2008_v32 = vpop.f32.mrf.mxu3  ;;  %v1723_v45 = vpop.f32.mrf.mxu1 }
 0x29e   : > { %v2058_v23 = vadd.f32 %v2008_v32, %v1902_v4  ;;  %v1770_v17 = vadd.f32 %v1723_v45, %v3713_v56 }
 0x2a0   : > { %v2198_v24 = vadd.f32 %v2148_v62, %v2058_v23  ;;  %v1854_v22 = vpop.f32.mrf.mxu2 }
 0x2a1   : > { %v1903_v16 = vadd.f32 %v1854_v22, %v1769_v47 }
 0x2a2   : > { %v2229_v10 = vadd.f32 %v2228_v34, %v2198_v24  ;;  %v2268_v15 = vmul.f32 %v2198_v24, %v2198_v24 }
 0x2a4   : > { %v2299_v1 = vadd.f32 %v2298_v28, %v2268_v15  ;;  %v2150_v39 = vpop.f32.mrf.mxu0 }
 0x2a5   : > { %v2010_v12 = vpop.f32.mrf.mxu3  ;;  %v1725_v57 = vpop.f32.mrf.mxu1 }
 0x2a6   : > { %v2059_v27 = vadd.f32 %v2010_v12, %v1903_v16  ;;  %v1771_v43 = vadd.f32 %v1725_v57, %v3718_v0 }
 0x2a8   : > { %v2199_v42 = vadd.f32 %v2150_v39, %v2059_v27  ;;  %v1857_v38 = vpop.f32.mrf.mxu2 }
 0x2a9   : > { %v1904_v25 = vadd.f32 %v1857_v38, %v1770_v17 }
 0x2aa   : > { %v2230_v35 = vadd.f32 %v2229_v10, %v2199_v42  ;;  %v2269_v41 = vmul.f32 %v2199_v42, %v2199_v42 }
 0x2ac   : > { %v2300_v36 = vadd.f32 %v2299_v1, %v2269_v41  ;;  %v2153_v26 = vpop.f32.mrf.mxu0 }
 0x2ad   : > { %v2013_v61 = vpop.f32.mrf.mxu3  ;;  %v1728_v60 = vpop.f32.mrf.mxu1 }
 0x2ae   : > { %v2060_v9 = vadd.f32 %v2013_v61, %v1904_v25  ;;  %v1772_v33 = vadd.f32 %v1728_v60, %v3727_v29 }
 0x2b0   : > { %v2200_v2 = vadd.f32 %v2153_v26, %v2060_v9  ;;  %v1859_v37 = vpop.f32.mrf.mxu2 }
 0x2b1   : > { %v1905_v58 = vadd.f32 %v1859_v37, %v1771_v43 }
 0x2b2   : > { %v2231_v46 = vadd.f32 %v2230_v35, %v2200_v2  ;;  %v2270_v11 = vmul.f32 %v2200_v2, %v2200_v2 }
 0x2b4   : > { %v2301_v21 = vadd.f32 %v2300_v36, %v2270_v11  ;;  %v2155_v31 = vpop.f32.mrf.mxu0 }
 0x2b5   : > { %v2015_v59 = vpop.f32.mrf.mxu3  ;;  %v1730_v56 = vpop.f32.mrf.mxu1 }
 0x2b6   : > { %v2061_v44 = vadd.f32 %v2015_v59, %v1905_v58  ;;  %v1773_v50 = vadd.f32 %v1730_v56, %v3732_v52 }
 0x2b8   : > { %v2201_v55 = vadd.f32 %v2155_v31, %v2061_v44  ;;  %v1862_v3 = vpop.f32.mrf.mxu2 }
 0x2b9   : > { %v1906_v13 = vadd.f32 %v1862_v3, %v1772_v33 }
 0x2ba   : > { %v2232_v14 = vadd.f32 %v2231_v46, %v2201_v55  ;;  %v2271_v40 = vmul.f32 %v2201_v55, %v2201_v55 }
 0x2bc   : > { %v2302_v19 = vadd.f32 %v2301_v21, %v2271_v40  ;;  %v2158_v48 = vpop.f32.mrf.mxu0 }
 0x2bd   : > { %v2018_v30 = vpop.f32.mrf.mxu3  ;;  %v1733_v0 = vpop.f32.mrf.mxu1 }
 0x2be   : > { %v2062_v49 = vadd.f32 %v2018_v30, %v1906_v13  ;;  %v1774_v23 = vadd.f32 %v1733_v0, %v3741_v20 }
 0x2c0   : > { %v2202_v7 = vadd.f32 %v2158_v48, %v2062_v49  ;;  %v1864_v5 = vpop.f32.mrf.mxu2 }
 0x2c1   : > { %v1907_v34 = vadd.f32 %v1864_v5, %v1773_v50 }
 0x2c2   : > { %v2233_v54 = vadd.f32 %v2232_v14, %v2202_v7  ;;  %v2272_v4 = vmul.f32 %v2202_v7, %v2202_v7 }
 0x2c4   : > { %v2303_v53 = vadd.f32 %v2302_v19, %v2272_v4  ;;  %v2160_v28 = vpop.f32.mrf.mxu0 }
 0x2c5   : > { %v2020_v62 = vpop.f32.mrf.mxu3  ;;  %v1735_v29 = vpop.f32.mrf.mxu1 }
 0x2c6   : > { %v2063_v32 = vadd.f32 %v2020_v62, %v1907_v34  ;;  %v1775_v57 = vadd.f32 %v1735_v29, %v3746_v8 }
 0x2c8   : > { %v2203_v45 = vadd.f32 %v2160_v28, %v2063_v32  ;;  %v1867_v24 = vpop.f32.mrf.mxu2 }
 0x2c9   : > { %v1908_v10 = vadd.f32 %v1867_v24, %v1774_v23 }
 0x2ca   : > { %v2234_v47 = vadd.f32 %v2233_v54, %v2203_v45  ;;  %v2273_v22 = vmul.f32 %v2203_v45, %v2203_v45 }
 0x2cc   : > { %v2304_v15 = vadd.f32 %v2303_v53, %v2273_v22  ;;  %v2163_v16 = vpop.f32.mrf.mxu0 }
 0x2cd   : > { %v2023_v1 = vpop.f32.mrf.mxu3  ;;  %v1738_v39 = vpop.f32.mrf.mxu1 }
 0x2ce   : > { %v2064_v52 = vadd.f32 %v2023_v1, %v1908_v10  ;;  %v1776_v26 = vadd.f32 %v1738_v39, %v3755_v51 }
 0x2d0   : > { %v2204_v12 = vadd.f32 %v2163_v16, %v2064_v52  ;;  %v1869_v27 = vpop.f32.mrf.mxu2 }
 0x2d1   : > { %v1909_v38 = vadd.f32 %v1869_v27, %v1775_v57 }
 0x2d2   : > { %v2235_v42 = vadd.f32 %v2234_v47, %v2204_v12  ;;  %v2274_v17 = vmul.f32 %v2204_v12, %v2204_v12 }
 0x2d4   : > { %v2305_v35 = vadd.f32 %v2304_v15, %v2274_v17  ;;  %v2165_v41 = vpop.f32.mrf.mxu0 }
 0x2d5   : > { %v2025_v25 = vpop.f32.mrf.mxu3  ;;  %v1740_v60 = vpop.f32.mrf.mxu1 }
 0x2d6   : > { %v2065_v20 = vadd.f32 %v2025_v25, %v1909_v38  ;;  %v1777_v21 = vadd.f32 %v1740_v60, %v3760_v63 }
 0x2d8   : > { %v2205_v36 = vadd.f32 %v2165_v41, %v2065_v20  ;;  %v1872_v61 = vpop.f32.mrf.mxu2 }
 0x2d9   : > { %v1910_v43 = vadd.f32 %v1872_v61, %v1776_v26 }
 0x2da   : > { %v2236_v9 = vadd.f32 %v2235_v42, %v2205_v36  ;;  %v2275_v2 = vmul.f32 %v2205_v36, %v2205_v36 }
 0x2dc   : > { %v2306_v37 = vadd.f32 %v2305_v35, %v2275_v2  ;;  %v2168_v46 = vpop.f32.mrf.mxu0 }
 0x2dd   : > { %v2028_v11 = vpop.f32.mrf.mxu3  ;;  %v1743_v55 = vpop.f32.mrf.mxu1 }
 0x2de   : > { %v2066_v8 = vadd.f32 %v2028_v11, %v1910_v43  ;;  %v1778_v13 = vadd.f32 %v1743_v55, %v3770_v6 }
 0x2e0   : > { %v2206_v58 = vadd.f32 %v2168_v46, %v2066_v8  ;;  %v1874_v31 = vpop.f32.mrf.mxu2 }
 0x2e1   : > { %v1911_v44 = vadd.f32 %v1874_v31, %v1777_v21 }
 0x2e2   : > { %v2237_v59 = vadd.f32 %v2236_v9, %v2206_v58  ;;  %v2276_v56 = vmul.f32 %v2206_v58, %v2206_v58 }
 0x2e4   : > { %v2307_v33 = vadd.f32 %v2306_v37, %v2276_v56  ;;  %v2170_v3 = vpop.f32.mrf.mxu0 }
 0x2e5   : > { %v2030_v51 = vpop.f32.mrf.mxu3  ;;  %v1745_v7 = vpop.f32.mrf.mxu1 }
 0x2e6   : > { %v2067_v14 = vadd.f32 %v2030_v51, %v1911_v44  ;;  %v1779_v4 = vadd.f32 %v1745_v7, %v3775_v18 }
 0x2e8   : > { %v2207_v40 = vadd.f32 %v2170_v3, %v2067_v14  ;;  %v1877_v19 = vpop.f32.mrf.mxu2 }
 0x2e9   : > { %v1912_v0 = vadd.f32 %v1877_v19, %v1778_v13 }
 0x2ea   : > { %v2238_v48 = vadd.f32 %v2237_v59, %v2207_v40  ;;  %v2277_v30 = vmul.f32 %v2207_v40, %v2207_v40 }
 0x2ec   : > { %v2308_v49 = vadd.f32 %v2307_v33, %v2277_v30  ;;  %v2173_v50 = vpop.f32.mrf.mxu0 }
 0x2ed   : > { %v2033_v63 = vpop.f32.mrf.mxu3 }
 0x2ee   : > { %v2068_v5 = vadd.f32 %v2033_v63, %v1912_v0 }
 0x2f0   : > { %v2208_v54 = vadd.f32 %v2173_v50, %v2068_v5  ;;  %v1879_v34 = vpop.f32.mrf.mxu2 }
 0x2f1   : > { %v1913_v62 = vadd.f32 %v1879_v34, %v1779_v4 }
 0x2f2   : > { %v2239_v53 = vadd.f32 %v2238_v48, %v2208_v54  ;;  %v2278_v28 = vmul.f32 %v2208_v54, %v2208_v54 }
 0x2f4   : > { %v2309_v29 = vadd.f32 %v2308_v49, %v2278_v28  ;;  %v2175_v45 = vpop.f32.mrf.mxu0 }
 0x2f5   : > { %v2035_v6 = vpop.f32.mrf.mxu3 }
 0x2f6   : > { %v2069_v32 = vadd.f32 %v2035_v6, %v1913_v62 }
 0x2f8   : > { %v2209_v23 = vadd.f32 %v2175_v45, %v2069_v32 }
 0x2fa   : > { %v2240_v24 = vadd.f32 %v2239_v53, %v2209_v23  ;;  %v2279_v47 = vmul.f32 %v2209_v23, %v2209_v23 }
 0x2fc   : > { %v2241_v22 = vrot.slane %v2240_v24, 4  ;;  %v2310_v10 = vadd.f32 %v2309_v29, %v2279_v47 }
 0x2fe   : > { %v2242_v15 = vadd.f32 %v2241_v22, %v2240_v24  ;;  %v2311_v16 = vrot.slane %v2310_v10, 4 }
 0x300   : > { %v2243_v18 = vrot.slane %v2242_v15, 2  ;;  %v2312_v1 = vadd.f32 %v2311_v16, %v2310_v10 }
 0x302   : > { %v2244_v52 = vadd.f32 %v2243_v18, %v2242_v15  ;;  %v2313_v39 = vrot.slane %v2312_v1, 2 }
 0x304   : > { %v2245_v12 = vrot.slane %v2244_v52, 1  ;;  %v2314_v57 = vadd.f32 %v2313_v39, %v2312_v1 }
 0x306   : > { %v2246_v27 = vadd.f32 %v2245_v12, %v2244_v52  ;;  %v2315_v42 = vrot.slane %v2314_v57, 1 }
 0x308   : > { %2247 = vst [vmem:[%s136_s3] sm:$0x1] %v2246_v27  ;;  %v2316_v17 = vadd.f32 %v2315_v42, %v2314_v57 }
 0x30a   : > { %2317 = vst [vmem:[%s136_s3 + $0x1] sm:$0x1] %v2316_v17 }
 0x30b   : > { %2741 = shalt.err (!%p2738_p3)
}
 0x30c   : > { %2667 = dma.vmem_to_hbm [thread:$0]  (%p2831_p5), %s2332_s4, 32, %s2334_s5, %s2319_s13  }
 0x30d PF: > { %p2673_p4 = scmp.ge.s32.totalorder %s2776_s12, 2  ;;  %s2345_s22 = sand.u32 1, %s2764_s9  }
 0x30e   : > { %s2346_s23 = scalar_lea.sflag [#allocation3], %s2345_s22 }
 0x30f   : > { %p2670_p7 = pnand %p2673_p4, %p2835_p6 }
 0x311   : > { %p2671_p8 = pneg %p2670_p7 }
 0x313   : > { %2759 = dma.done.wait (%p2671_p8), %s2346_s23, 32  }
 0x314   : > { %2761 = vsyncadd (%p2671_p8), %s2346_s23, 4294967264  ;;  %p12_p9 = scmp.ge.s32.totalorder %s2818_s15, 4   ;;  %s4066_s9 = smov %s2768_s10 }
 0x315   : > { %s4067_s10 = smov %s2772_s11  ;;  %s4068_s11 = smov %s2829_s18 }
 0x316   : > { %s4069_s12 = smov %s2818_s15  ;;  %14 = sbr.rel (!%p12_p9) target bundleno = 3 (0x3), region = 71 }
 0x31b   :  { %2352 = vsyncpa [#allocation3], 1 }
 0x31c   :  { %2354 = vsyncpa [#allocation3 + $0x1], 1 }

</bundles_post_ra>
